<compile_context>
chip_gen: v7x
topology: tpu7x:2x2x1
jax: 0.10.0
libtpu: 0.0.40
codegen_flags: <defaults>
</compile_context>

<pallas_src>
import functools
import math

import jax
import jax.numpy as jnp
import numpy as np
from jax import lax
from jax.experimental import pallas as pl
from jax.experimental.pallas import tpu as pltpu


# ----------------------------------------------------------------------------
# Per-generation tiling / VMEM configuration
# ----------------------------------------------------------------------------
def _round_up(x, m):
    return ((x + m - 1) // m) * m


def _tpu_config():
    """(dst_tile_target, src_tile_target, vmem_limit_bytes) per TPU generation."""
    vmem = 64 * 1024 * 1024
    try:
        info = pltpu.get_tpu_info()
        vmem = int(getattr(info, "vmem_capacity_bytes", vmem))
    except Exception:
        pass
    big_vmem = vmem >= 96 * 1024 * 1024          # v5e/v6e: 128 MiB; v7x: 64 MiB
    dst_target = 512 if big_vmem else 256
    src_target = 512
    vmem_limit = int(min(vmem * 3 // 4, 96 * 1024 * 1024))
    return dst_target, src_target, vmem_limit


def _choose_tiles(n, dst_target, src_target):
    """Returns (n_pad, dst_tile, src_tile); both tiles divide n_pad."""
    n8 = _round_up(n, 8)
    if n8 <= dst_target:
        return n8, n8, n8
    base = max(dst_target, src_target)           # 512; both targets divide it
    n_pad = _round_up(n, base)
    return n_pad, dst_target, src_target


# ----------------------------------------------------------------------------
# Kernel 1: per-row-tile projection (hoisted full-graph work, runs once).
#   h_ref     [TP, Fin]   bf16
#   wproj_ref [Fin, H*Dp] bf16   (all heads' projection, lane-dense)
#   wl_ref    [H, Fin]    bf16   (W[h] @ attn_l[h] folded)
#   wrt_ref   [Fin, H]    bf16   (W[h] @ attn_r[h] folded)
# outputs:
#   feat_ref  [TP, H*Dp]  bf16
#   el_ref    [H, TP]     f32    (src-side term, row/lane orientation)
#   er_ref    [TP, H]     f32    (dst-side term)
# ----------------------------------------------------------------------------
def _gat_proj_kernel(h_ref, wproj_ref, wl_ref, wrt_ref,
                     feat_ref, el_ref, er_ref):
    hb = h_ref[...]                                              # [TP, Fin] bf16
    feat_ref[...] = jnp.dot(hb, wproj_ref[...],
                            preferred_element_type=jnp.float32
                            ).astype(jnp.bfloat16)               # [TP, H*Dp]
    # el[h, row] = sum_f wl[h, f] * h[row, f]  (already lane-oriented, no transpose)
    el_ref[...] = lax.dot_general(wl_ref[...], hb,
                                  (((1,), (1,)), ((), ())),
                                  preferred_element_type=jnp.float32)  # [H, TP]
    er_ref[...] = jnp.dot(hb, wrt_ref[...],
                          preferred_element_type=jnp.float32)    # [TP, H]


# ----------------------------------------------------------------------------
# Kernel 2: attention / online-softmax / aggregation over (dst tile, src tile).
#   er_ref   [TN, H]    f32    dst-side attention term for this dst tile
#   el_ref   [H, TS]    f32    src-side attention term for this src tile
#   feat_ref [TS, H*Dp] bf16   projected features for this src tile
#   bias_ref [TN, TS]   bf16   additive adjacency bias (0 / -1e30)
#   b_ref    [1, H*Dp]  f32    layer bias
#   out_ref  [TN, H*Dp]
# scratch:
#   m_sc [TN, H] f32, l_sc [TN, H] f32, acc_sc [TN, H*Dp] f32
# ----------------------------------------------------------------------------
def _gat_attn_kernel(er_ref, el_ref, feat_ref, bias_ref, b_ref, out_ref,
                     m_sc, l_sc, acc_sc, *, num_heads, head_dim_pad, apply_elu):
    H, Dp = num_heads, head_dim_pad
    j = pl.program_id(1)
    neg_slope = jnp.float32(0.2)

    @pl.when(j == 0)
    def _():
        m_sc[...] = jnp.full_like(m_sc, -1e30)
        l_sc[...] = jnp.zeros_like(l_sc)
        acc_sc[...] = jnp.zeros_like(acc_sc)

    er = er_ref[...]                                             # [TN, H]
    el = el_ref[...]                                             # [H, TS]
    bias_e = bias_ref[...].astype(jnp.float32)                   # [TN, TS]
    feat = feat_ref[...]                                         # [TS, H*Dp] bf16

    for head in range(H):          # H is small (4 / 1); static unroll is fine.
        # e[dst, src] = LeakyReLU(er[dst] + el[src]) + adj_bias[dst, src]
        e = er[:, head:head + 1] + el[head:head + 1, :]          # [TN, TS]
        e = jnp.where(e > 0, e, neg_slope * e)
        e = e + bias_e

        m_prev = m_sc[:, head:head + 1]                          # [TN, 1]
        l_prev = l_sc[:, head:head + 1]
        m_new = jnp.maximum(m_prev, jnp.max(e, axis=-1, keepdims=True))
        corr = jnp.exp(m_prev - m_new)
        p = jnp.exp(e - m_new)                                   # [TN, TS]

        l_sc[:, head:head + 1] = corr * l_prev + jnp.sum(p, axis=-1, keepdims=True)
        acc_prev = acc_sc[:, head * Dp:(head + 1) * Dp]          # [TN, Dp]
        acc_sc[:, head * Dp:(head + 1) * Dp] = corr * acc_prev + jnp.dot(
            p.astype(jnp.bfloat16), feat[:, head * Dp:(head + 1) * Dp],
            preferred_element_type=jnp.float32)
        m_sc[:, head:head + 1] = m_new

    @pl.when(j == pl.num_programs(1) - 1)
    def _():
        outs = []
        for head in range(H):
            denom = jnp.maximum(l_sc[:, head:head + 1], jnp.float32(1e-30))
            inv = pl.reciprocal(denom, approx=True)              # EUP slot
            outs.append(acc_sc[:, head * Dp:(head + 1) * Dp] * inv)
        out = outs[0] if H == 1 else jnp.concatenate(outs, axis=-1)
        out = out + b_ref[...]
        if apply_elu:
            out = jnp.where(out > 0, out, jnp.exp(jnp.minimum(out, 0.0)) - 1.0)
        out_ref[...] = out.astype(out_ref.dtype)


# ----------------------------------------------------------------------------
# One GATConv layer (projection pallas_call + attention pallas_call).
# ----------------------------------------------------------------------------
def gat_layer(h, w, attn_l, attn_r, bias, adj_bias, *, apply_elu, out_dtype,
              n_pad, tn, ts, tp, vmem_limit):
    H, Fin, D = w.shape
    assert h.shape == (n_pad, Fin)

    # Pad per-head output dim so H*Dp is a multiple of 128 (unmasked full-width
    # stores).  Layer0 (4x32=128) needs no padding; layer1 pads 16 -> 128.
    step = 128 // math.gcd(H, 128)
    Dp = ((D + step - 1) // step) * step
    if Dp != D:
        w = jnp.pad(w, ((0, 0), (0, 0), (0, Dp - D)))
        attn_l = jnp.pad(attn_l, ((0, 0), (0, Dp - D)))
        attn_r = jnp.pad(attn_r, ((0, 0), (0, Dp - D)))
        bias = jnp.pad(bias, ((0, 0), (0, Dp - D)))
    HDp = H * Dp

    # Fold head weights into wide / tiny matrices (trace-time, XLA).
    wproj = jnp.transpose(w, (1, 0, 2)).reshape(Fin, HDp).astype(jnp.bfloat16)
    wl = jnp.einsum("hfd,hd->hf", w, attn_l).astype(jnp.bfloat16)     # [H, Fin]
    wrt = jnp.einsum("hfd,hd->fh", w, attn_r).astype(jnp.bfloat16)    # [Fin, H]
    b_flat = bias.reshape(1, HDp).astype(jnp.float32)
    h_bf = h.astype(jnp.bfloat16)

    # --- projection kernel: runs once per layer, tiled over node rows ---------
    feat, el, er = pl.pallas_call(
        _gat_proj_kernel,
        out_shape=(
            jax.ShapeDtypeStruct((n_pad, HDp), jnp.bfloat16),   # feat
            jax.ShapeDtypeStruct((H, n_pad), jnp.float32),      # el (row/lane)
            jax.ShapeDtypeStruct((n_pad, H), jnp.float32),      # er
        ),
        grid=(n_pad // tp,),
        in_specs=[
            pl.BlockSpec((tp, Fin), lambda i: (i, 0)),
            pl.BlockSpec((Fin, HDp), lambda i: (0, 0)),
            pl.BlockSpec((H, Fin), lambda i: (0, 0)),
            pl.BlockSpec((Fin, H), lambda i: (0, 0)),
        ],
        out_specs=[
            pl.BlockSpec((tp, HDp), lambda i: (i, 0)),
            pl.BlockSpec((H, tp), lambda i: (0, i)),
            pl.BlockSpec((tp, H), lambda i: (i, 0)),
        ],
        compiler_params=pltpu.CompilerParams(
            dimension_semantics=("parallel",),
            vmem_limit_bytes=vmem_limit),
    )(h_bf, wproj, wl, wrt)

    # --- attention kernel: (dst tile, src tile) grid, online softmax ----------
    kernel = functools.partial(_gat_attn_kernel, num_heads=H,
                               head_dim_pad=Dp, apply_elu=apply_elu)
    out = pl.pallas_call(
        kernel,
        out_shape=jax.ShapeDtypeStruct((n_pad, HDp), out_dtype),
        grid=(n_pad // tn, n_pad // ts),
        in_specs=[
            pl.BlockSpec((tn, H), lambda i, j: (i, 0)),      # er (dst tile)
            pl.BlockSpec((H, ts), lambda i, j: (0, j)),      # el (src tile)
            pl.BlockSpec((ts, HDp), lambda i, j: (j, 0)),    # feat (src tile)
            pl.BlockSpec((tn, ts), lambda i, j: (i, j)),     # adj additive bias
            pl.BlockSpec((1, HDp), lambda i, j: (0, 0)),     # layer bias
        ],
        out_specs=pl.BlockSpec((tn, HDp), lambda i, j: (i, 0)),
        scratch_shapes=[
            pltpu.VMEM((tn, H), jnp.float32),      # running max
            pltpu.VMEM((tn, H), jnp.float32),      # running denominator
            pltpu.VMEM((tn, HDp), jnp.float32),    # running accumulator
        ],
        compiler_params=pltpu.CompilerParams(
            dimension_semantics=("parallel", "arbitrary"),
            vmem_limit_bytes=vmem_limit),
    )(er, el, feat, adj_bias, b_flat)

    if Dp != D:   # slice away padded lanes (cheap XLA slice, kernel store stays wide)
        out = out.reshape(n_pad, H, Dp)[:, :, :D].reshape(n_pad, H * D)
    return out


def gat_forward(adj, x, params):
    """Full GAT.forward: layer0 -> ELU -> flatten(1), layer1 -> mean(heads)."""
    N = x.shape[0]
    dst_target, src_target, vmem_limit = _tpu_config()
    n_pad, tn, ts = _choose_tiles(N, dst_target, src_target)
    tp = n_pad if n_pad <= 512 else 512

    if n_pad != N:   # pad to a tileable multiple; padded srcs masked, dst rows sliced
        x = jnp.pad(x, ((0, n_pad - N), (0, 0)))
        adj = jnp.pad(adj, ((0, n_pad - N), (0, n_pad - N)))
    adj_bias = jnp.where(adj > 0, jnp.float32(0.0),
                         jnp.float32(-1e30)).astype(jnp.bfloat16)

    common = dict(n_pad=n_pad, tn=tn, ts=ts, tp=tp, vmem_limit=vmem_limit)
    # Layer0 output is lane-dense [N, H0*hid] (flatten(1) is a no-op); kept bf16
    # since it is only consumed as a matmul operand by layer1.
    h = gat_layer(x, params["w1"], params["al1"], params["ar1"], params["b1"],
                  adj_bias, apply_elu=True, out_dtype=jnp.bfloat16, **common)
    h = gat_layer(h, params["w2"], params["al2"], params["ar2"], params["b2"],
                  adj_bias, apply_elu=False, out_dtype=jnp.float32, **common)
    H2, _, D2 = params["w2"].shape
    out = h[:N].reshape(N, H2, D2)
    return out.mean(axis=1)


# ----------------------------------------------------------------------------
# Pure-JAX f32 reference (for correctness check only)
# ----------------------------------------------------------------------------
def _ref_layer(h, w, al, ar, b, adj, apply_elu):
    H = w.shape[0]
    outs = []
    for k in range(H):
        feat = h @ w[k]
        el = (feat * al[k]).sum(-1)          # [N] src
        er = (feat * ar[k]).sum(-1)          # [N] dst
        e = er[:, None] + el[None, :]
        e = jnp.where(e > 0, e, 0.2 * e)
        e = jnp.where(adj > 0, e, -1e30)
        p = jnp.where(adj > 0, jnp.exp(e - e.max(-1, keepdims=True)), 0.0)
        alpha = p / p.sum(-1, keepdims=True)
        o = alpha @ feat + b[k]
        if apply_elu:
            o = jnp.where(o > 0, o, jnp.exp(jnp.minimum(o, 0.0)) - 1.0)
        outs.append(o)
    return jnp.stack(outs, axis=1)           # [N, H, D]


def _ref_forward(adj, x, p):
    h = _ref_layer(x, p["w1"], p["al1"], p["ar1"], p["b1"], adj, True)
    h = h.reshape(h.shape[0], -1)
    h = _ref_layer(h, p["w2"], p["al2"], p["ar2"], p["b2"], adj, False)
    return h.mean(axis=1)


# ----------------------------------------------------------------------------
if __name__ == "__main__":
    N = 8            # nodes
    in_size = 16
    hid_size = 32
    out_size = 16
    heads = [4, 1]

    key = jax.random.PRNGKey(0)
    ks = jax.random.split(key, 10)

    def xavier(k, shape):
        fan = shape[-2] + shape[-1]
        return jax.random.normal(k, shape, jnp.float32) * jnp.sqrt(2.0 / fan)

    params = {
        # layer 1: in_size -> hid_size, heads[0]
        "w1":  xavier(ks[0], (heads[0], in_size, hid_size)),
        "al1": xavier(ks[1], (heads[0], hid_size)),
        "ar1": xavier(ks[2], (heads[0], hid_size)),
        "b1":  jnp.zeros((heads[0], hid_size), jnp.float32),
        # layer 2: hid_size*heads[0] -> out_size, heads[1]
        "w2":  xavier(ks[3], (heads[1], hid_size * heads[0], out_size)),
        "al2": xavier(ks[4], (heads[1], out_size)),
        "ar2": xavier(ks[5], (heads[1], out_size)),
        "b2":  jnp.zeros((heads[1], out_size), jnp.float32),
    }

    # deterministic node features
    x = jax.random.normal(ks[6], (N, in_size), jnp.float32)

    # deterministic graph: ring (both directions) + self-loops; adj[dst, src]
    adj_np = np.eye(N, dtype=np.float32)
    for i in range(N):
        adj_np[i, (i + 1) % N] = 1.0
        adj_np[i, (i - 1) % N] = 1.0
    adj = jnp.asarray(adj_np)

    fwd = jax.jit(gat_forward)
    out = jax.block_until_ready(fwd(adj, x, params))
    assert out.shape == (N, out_size)

    # Kernel uses bf16 matmul operands + approx reciprocal (perf), so compare
    # against the f32 reference with a correspondingly relaxed tolerance.
    ref = jax.block_until_ready(_ref_forward(adj, x, params))
    np.testing.assert_allclose(np.asarray(out), np.asarray(ref),
                               rtol=5e-2, atol=5e-2)

    print("KERNEL_OK")
</pallas_src>

<mosaic_0001>
module attributes {stable_mosaic.version = 11 : i64} {
  func.func @_gat_proj_kernel(%arg0: i32, %arg1: memref<8x16xbf16, #tpu.memory_space<vmem>>, %arg2: memref<16x128xbf16, #tpu.memory_space<vmem>>, %arg3: memref<4x16xbf16, #tpu.memory_space<vmem>>, %arg4: memref<16x4xbf16, #tpu.memory_space<vmem>>, %arg5: memref<8x128xbf16, #tpu.memory_space<vmem>>, %arg6: memref<4x8xf32, #tpu.memory_space<vmem>>, %arg7: memref<8x4xf32, #tpu.memory_space<vmem>>) attributes {dimension_semantics = [#tpu.dimension_semantics<parallel>], iteration_bounds = array<i64: 1>, scalar_prefetch = 0 : i64, scratch_operands = 0 : i64, tpu.core_type = #tpu.core_type<tc>, window_params = [{transform_indices = @transform_0, window_bounds = array<i64: 8, 16>}, {pipeline_mode = #tpu.pipeline_mode<synchronous>, transform_indices = @transform_1, window_bounds = array<i64: 16, 128>}, {pipeline_mode = #tpu.pipeline_mode<synchronous>, transform_indices = @transform_2, window_bounds = array<i64: 4, 16>}, {pipeline_mode = #tpu.pipeline_mode<synchronous>, transform_indices = @transform_3, window_bounds = array<i64: 16, 4>}, {transform_indices = @transform_4, window_bounds = array<i64: 8, 128>}, {transform_indices = @transform_5, window_bounds = array<i64: 4, 8>}, {transform_indices = @transform_6, window_bounds = array<i64: 8, 4>}]} {
    %c0 = arith.constant 0 : index
    %c0_0 = arith.constant 0 : index
    %0 = vector.load %arg1[%c0, %c0_0] : memref<8x16xbf16, #tpu.memory_space<vmem>>, vector<8x16xbf16>
    %c0_1 = arith.constant 0 : index
    %c0_2 = arith.constant 0 : index
    %1 = vector.load %arg2[%c0_1, %c0_2] : memref<16x128xbf16, #tpu.memory_space<vmem>>, vector<16x128xbf16>
    %cst = arith.constant dense<0.000000e+00> : vector<8x128xf32>
    %2 = tpu.matmul %0, %1, %cst {dimension_numbers = #tpu.dot_dimension_numbers<[1], [0], [0], [1], [0, 0, 1, 1], [], []>} : vector<8x16xbf16>, vector<16x128xbf16>, vector<8x128xf32> -> vector<8x128xf32>
    %3 = arith.truncf %2 : vector<8x128xf32> to vector<8x128xbf16>
    %c0_3 = arith.constant 0 : index
    %c0_4 = arith.constant 0 : index
    %4 = vector.load %arg5[%c0_3, %c0_4] : memref<8x128xbf16, #tpu.memory_space<vmem>>, vector<8x128xbf16>
    tpu.vector_store %arg5[%c0_3, %c0_4], %3 {strides = array<i32>} : memref<8x128xbf16, #tpu.memory_space<vmem>>, vector<8x128xbf16>,
    %c0_5 = arith.constant 0 : index
    %c0_6 = arith.constant 0 : index
    %5 = vector.load %arg3[%c0_5, %c0_6] : memref<4x16xbf16, #tpu.memory_space<vmem>>, vector<4x16xbf16>
    %cst_7 = arith.constant dense<0.000000e+00> : vector<4x8xf32>
    %6 = tpu.matmul %5, %0, %cst_7 {dimension_numbers = #tpu.dot_dimension_numbers<[1], [1], [0], [0], [0, 0, 1, 0], [], []>} : vector<4x16xbf16>, vector<8x16xbf16>, vector<4x8xf32> -> vector<4x8xf32>
    %c0_8 = arith.constant 0 : index
    %c0_9 = arith.constant 0 : index
    %7 = vector.load %arg6[%c0_8, %c0_9] : memref<4x8xf32, #tpu.memory_space<vmem>>, vector<4x8xf32>
    tpu.vector_store %arg6[%c0_8, %c0_9], %6 {strides = array<i32>} : memref<4x8xf32, #tpu.memory_space<vmem>>, vector<4x8xf32>,
    %c0_10 = arith.constant 0 : index
    %c0_11 = arith.constant 0 : index
    %8 = vector.load %arg4[%c0_10, %c0_11] : memref<16x4xbf16, #tpu.memory_space<vmem>>, vector<16x4xbf16>
    %cst_12 = arith.constant dense<0.000000e+00> : vector<8x4xf32>
    %9 = tpu.matmul %0, %8, %cst_12 {dimension_numbers = #tpu.dot_dimension_numbers<[1], [0], [0], [1], [0, 0, 1, 1], [], []>} : vector<8x16xbf16>, vector<16x4xbf16>, vector<8x4xf32> -> vector<8x4xf32>
    %c0_13 = arith.constant 0 : index
    %c0_14 = arith.constant 0 : index
    %10 = vector.load %arg7[%c0_13, %c0_14] : memref<8x4xf32, #tpu.memory_space<vmem>>, vector<8x4xf32>
    tpu.vector_store %arg7[%c0_13, %c0_14], %9 {strides = array<i32>} : memref<8x4xf32, #tpu.memory_space<vmem>>, vector<8x4xf32>,
    return
  }
  func.func @transform_0(%arg0: i32) -> (i32, i32) {
    %c0_i32 = arith.constant 0 : i32
    %c0_i32_0 = arith.constant 0 : i32
    return %arg0, %c0_i32 : i32, i32
  }
  func.func @transform_1(%arg0: i32) -> (i32, i32) {
    %c0_i32 = arith.constant 0 : i32
    %c0_i32_0 = arith.constant 0 : i32
    %c0_i32_1 = arith.constant 0 : i32
    return %c0_i32, %c0_i32_0 : i32, i32
  }
  func.func @transform_2(%arg0: i32) -> (i32, i32) {
    %c0_i32 = arith.constant 0 : i32
    %c0_i32_0 = arith.constant 0 : i32
    %c0_i32_1 = arith.constant 0 : i32
    return %c0_i32, %c0_i32_0 : i32, i32
  }
  func.func @transform_3(%arg0: i32) -> (i32, i32) {
    %c0_i32 = arith.constant 0 : i32
    %c0_i32_0 = arith.constant 0 : i32
    %c0_i32_1 = arith.constant 0 : i32
    return %c0_i32, %c0_i32_0 : i32, i32
  }
  func.func @transform_4(%arg0: i32) -> (i32, i32) {
    %c0_i32 = arith.constant 0 : i32
    %c0_i32_0 = arith.constant 0 : i32
    return %arg0, %c0_i32 : i32, i32
  }
  func.func @transform_5(%arg0: i32) -> (i32, i32) {
    %c0_i32 = arith.constant 0 : i32
    %c0_i32_0 = arith.constant 0 : i32
    return %c0_i32, %arg0 : i32, i32
  }
  func.func @transform_6(%arg0: i32) -> (i32, i32) {
    %c0_i32 = arith.constant 0 : i32
    %c0_i32_0 = arith.constant 0 : i32
    return %arg0, %c0_i32 : i32, i32
  }
}

module attributes {stable_mosaic.version = 11 : i64} {
  func.func @_gat_proj_kernel(%arg0: i32, %arg1: memref<8x128xbf16, #tpu.memory_space<vmem>>, %arg2: memref<128x128xbf16, #tpu.memory_space<vmem>>, %arg3: memref<1x128xbf16, #tpu.memory_space<vmem>>, %arg4: memref<128x1xbf16, #tpu.memory_space<vmem>>, %arg5: memref<8x128xbf16, #tpu.memory_space<vmem>>, %arg6: memref<1x8xf32, #tpu.memory_space<vmem>>, %arg7: memref<8x1xf32, #tpu.memory_space<vmem>>) attributes {dimension_semantics = [#tpu.dimension_semantics<parallel>], iteration_bounds = array<i64: 1>, scalar_prefetch = 0 : i64, scratch_operands = 0 : i64, tpu.core_type = #tpu.core_type<tc>, window_params = [{transform_indices = @transform_0, window_bounds = array<i64: 8, 128>}, {pipeline_mode = #tpu.pipeline_mode<synchronous>, transform_indices = @transform_1, window_bounds = array<i64: 128, 128>}, {pipeline_mode = #tpu.pipeline_mode<synchronous>, transform_indices = @transform_2, window_bounds = array<i64: 1, 128>}, {pipeline_mode = #tpu.pipeline_mode<synchronous>, transform_indices = @transform_3, window_bounds = array<i64: 128, 1>}, {transform_indices = @transform_4, window_bounds = array<i64: 8, 128>}, {transform_indices = @transform_5, window_bounds = array<i64: 1, 8>}, {transform_indices = @transform_6, window_bounds = array<i64: 8, 1>}]} {
    %c0 = arith.constant 0 : index
    %c0_0 = arith.constant 0 : index
    %0 = vector.load %arg1[%c0, %c0_0] : memref<8x128xbf16, #tpu.memory_space<vmem>>, vector<8x128xbf16>
    %c0_1 = arith.constant 0 : index
    %c0_2 = arith.constant 0 : index
    %1 = vector.load %arg2[%c0_1, %c0_2] : memref<128x128xbf16, #tpu.memory_space<vmem>>, vector<128x128xbf16>
    %cst = arith.constant dense<0.000000e+00> : vector<8x128xf32>
    %2 = tpu.matmul %0, %1, %cst {dimension_numbers = #tpu.dot_dimension_numbers<[1], [0], [0], [1], [0, 0, 1, 1], [], []>} : vector<8x128xbf16>, vector<128x128xbf16>, vector<8x128xf32> -> vector<8x128xf32>
    %3 = arith.truncf %2 : vector<8x128xf32> to vector<8x128xbf16>
    %c0_3 = arith.constant 0 : index
    %c0_4 = arith.constant 0 : index
    %4 = vector.load %arg5[%c0_3, %c0_4] : memref<8x128xbf16, #tpu.memory_space<vmem>>, vector<8x128xbf16>
    tpu.vector_store %arg5[%c0_3, %c0_4], %3 {strides = array<i32>} : memref<8x128xbf16, #tpu.memory_space<vmem>>, vector<8x128xbf16>,
    %c0_5 = arith.constant 0 : index
    %c0_6 = arith.constant 0 : index
    %5 = vector.load %arg3[%c0_5, %c0_6] : memref<1x128xbf16, #tpu.memory_space<vmem>>, vector<1x128xbf16>
    %cst_7 = arith.constant dense<0.000000e+00> : vector<1x8xf32>
    %6 = tpu.matmul %5, %0, %cst_7 {dimension_numbers = #tpu.dot_dimension_numbers<[1], [1], [0], [0], [0, 0, 1, 0], [], []>} : vector<1x128xbf16>, vector<8x128xbf16>, vector<1x8xf32> -> vector<1x8xf32>
    %c0_8 = arith.constant 0 : index
    %c0_9 = arith.constant 0 : index
    %7 = vector.load %arg6[%c0_8, %c0_9] : memref<1x8xf32, #tpu.memory_space<vmem>>, vector<1x8xf32>
    tpu.vector_store %arg6[%c0_8, %c0_9], %6 {strides = array<i32>} : memref<1x8xf32, #tpu.memory_space<vmem>>, vector<1x8xf32>,
    %c0_10 = arith.constant 0 : index
    %c0_11 = arith.constant 0 : index
    %8 = vector.load %arg4[%c0_10, %c0_11] : memref<128x1xbf16, #tpu.memory_space<vmem>>, vector<128x1xbf16>
    %cst_12 = arith.constant dense<0.000000e+00> : vector<8x1xf32>
    %9 = tpu.matmul %0, %8, %cst_12 {dimension_numbers = #tpu.dot_dimension_numbers<[1], [0], [0], [1], [0, 0, 1, 1], [], []>} : vector<8x128xbf16>, vector<128x1xbf16>, vector<8x1xf32> -> vector<8x1xf32>
    %c0_13 = arith.constant 0 : index
    %c0_14 = arith.constant 0 : index
    %10 = vector.load %arg7[%c0_13, %c0_14] : memref<8x1xf32, #tpu.memory_space<vmem>>, vector<8x1xf32>
    tpu.vector_store %arg7[%c0_13, %c0_14], %9 {strides = array<i32>} : memref<8x1xf32, #tpu.memory_space<vmem>>, vector<8x1xf32>,
    return
  }
  func.func @transform_0(%arg0: i32) -> (i32, i32) {
    %c0_i32 = arith.constant 0 : i32
    %c0_i32_0 = arith.constant 0 : i32
    return %arg0, %c0_i32 : i32, i32
  }
  func.func @transform_1(%arg0: i32) -> (i32, i32) {
    %c0_i32 = arith.constant 0 : i32
    %c0_i32_0 = arith.constant 0 : i32
    %c0_i32_1 = arith.constant 0 : i32
    return %c0_i32, %c0_i32_0 : i32, i32
  }
  func.func @transform_2(%arg0: i32) -> (i32, i32) {
    %c0_i32 = arith.constant 0 : i32
    %c0_i32_0 = arith.constant 0 : i32
    %c0_i32_1 = arith.constant 0 : i32
    return %c0_i32, %c0_i32_0 : i32, i32
  }
  func.func @transform_3(%arg0: i32) -> (i32, i32) {
    %c0_i32 = arith.constant 0 : i32
    %c0_i32_0 = arith.constant 0 : i32
    %c0_i32_1 = arith.constant 0 : i32
    return %c0_i32, %c0_i32_0 : i32, i32
  }
  func.func @transform_4(%arg0: i32) -> (i32, i32) {
    %c0_i32 = arith.constant 0 : i32
    %c0_i32_0 = arith.constant 0 : i32
    return %arg0, %c0_i32 : i32, i32
  }
  func.func @transform_5(%arg0: i32) -> (i32, i32) {
    %c0_i32 = arith.constant 0 : i32
    %c0_i32_0 = arith.constant 0 : i32
    return %c0_i32, %arg0 : i32, i32
  }
  func.func @transform_6(%arg0: i32) -> (i32, i32) {
    %c0_i32 = arith.constant 0 : i32
    %c0_i32_0 = arith.constant 0 : i32
    return %arg0, %c0_i32 : i32, i32
  }
}

module attributes {stable_mosaic.version = 11 : i64} {
  func.func @_gat_attn_kernel(%arg0: i32, %arg1: i32, %arg2: memref<8x4xf32, #tpu.memory_space<vmem>>, %arg3: memref<4x8xf32, #tpu.memory_space<vmem>>, %arg4: memref<8x128xbf16, #tpu.memory_space<vmem>>, %arg5: memref<8x8xbf16, #tpu.memory_space<vmem>>, %arg6: memref<1x128xf32, #tpu.memory_space<vmem>>, %arg7: memref<8x128xbf16, #tpu.memory_space<vmem>>, %arg8: memref<8x4xf32, #tpu.memory_space<vmem>>, %arg9: memref<8x4xf32, #tpu.memory_space<vmem>>, %arg10: memref<8x128xf32, #tpu.memory_space<vmem>>) attributes {dimension_semantics = [#tpu.dimension_semantics<parallel>, #tpu.dimension_semantics<arbitrary>], iteration_bounds = array<i64: 1, 1>, scalar_prefetch = 0 : i64, scratch_operands = 3 : i64, tpu.core_type = #tpu.core_type<tc>, window_params = [{transform_indices = @transform_0, window_bounds = array<i64: 8, 4>}, {transform_indices = @transform_1, window_bounds = array<i64: 4, 8>}, {transform_indices = @transform_2, window_bounds = array<i64: 8, 128>}, {transform_indices = @transform_3, window_bounds = array<i64: 8, 8>}, {pipeline_mode = #tpu.pipeline_mode<synchronous>, transform_indices = @transform_4, window_bounds = array<i64: 1, 128>}, {transform_indices = @transform_5, window_bounds = array<i64: 8, 128>}]} {
    %c0_i32 = arith.constant 0 : i32
    %0 = arith.cmpi eq, %arg1, %c0_i32 : i32
    %1 = arith.extui %0 : i1 to i32
    %c0_i32_0 = arith.constant 0 : i32
    %2 = arith.cmpi ne, %1, %c0_i32_0 : i32
    scf.if %2 {
      %cst_71 = arith.constant -1.000000e+30 : f32
      %151 = vector.broadcast %cst_71 : f32 to vector<8x4xf32>
      %c0_72 = arith.constant 0 : index
      %c0_73 = arith.constant 0 : index
      %152 = vector.load %arg8[%c0_72, %c0_73] : memref<8x4xf32, #tpu.memory_space<vmem>>, vector<8x4xf32>
      tpu.vector_store %arg8[%c0_72, %c0_73], %151 {strides = array<i32>} : memref<8x4xf32, #tpu.memory_space<vmem>>, vector<8x4xf32>,
      %cst_74 = arith.constant 0.000000e+00 : f32
      %153 = vector.broadcast %cst_74 : f32 to vector<8x4xf32>
      %c0_75 = arith.constant 0 : index
      %c0_76 = arith.constant 0 : index
      %154 = vector.load %arg9[%c0_75, %c0_76] : memref<8x4xf32, #tpu.memory_space<vmem>>, vector<8x4xf32>
      tpu.vector_store %arg9[%c0_75, %c0_76], %153 {strides = array<i32>} : memref<8x4xf32, #tpu.memory_space<vmem>>, vector<8x4xf32>,
      %cst_77 = arith.constant 0.000000e+00 : f32
      %155 = vector.broadcast %cst_77 : f32 to vector<8x128xf32>
      %c0_78 = arith.constant 0 : index
      %c0_79 = arith.constant 0 : index
      %156 = vector.load %arg10[%c0_78, %c0_79] : memref<8x128xf32, #tpu.memory_space<vmem>>, vector<8x128xf32>
      tpu.vector_store %arg10[%c0_78, %c0_79], %155 {strides = array<i32>} : memref<8x128xf32, #tpu.memory_space<vmem>>, vector<8x128xf32>,
    } else {
    }
    %c0 = arith.constant 0 : index
    %c0_1 = arith.constant 0 : index
    %3 = vector.load %arg2[%c0, %c0_1] : memref<8x4xf32, #tpu.memory_space<vmem>>, vector<8x4xf32>
    %c0_2 = arith.constant 0 : index
    %c0_3 = arith.constant 0 : index
    %4 = vector.load %arg3[%c0_2, %c0_3] : memref<4x8xf32, #tpu.memory_space<vmem>>, vector<4x8xf32>
    %c0_4 = arith.constant 0 : index
    %c0_5 = arith.constant 0 : index
    %5 = vector.load %arg5[%c0_4, %c0_5] : memref<8x8xbf16, #tpu.memory_space<vmem>>, vector<8x8xbf16>
    %6 = arith.extf %5 : vector<8x8xbf16> to vector<8x8xf32>
    %c0_6 = arith.constant 0 : index
    %c0_7 = arith.constant 0 : index
    %7 = vector.load %arg4[%c0_6, %c0_7] : memref<8x128xbf16, #tpu.memory_space<vmem>>, vector<8x128xbf16>
    %8 = vector.extract_strided_slice %3 {offsets = [0, 0], sizes = [8, 1], strides = [1, 1]} : vector<8x4xf32> to vector<8x1xf32>
    %9 = vector.extract_strided_slice %4 {offsets = [0, 0], sizes = [1, 8], strides = [1, 1]} : vector<4x8xf32> to vector<1x8xf32>
    %10 = vector.broadcast %8 : vector<8x1xf32> to vector<8x8xf32>
    %11 = vector.broadcast %9 : vector<1x8xf32> to vector<8x8xf32>
    %12 = arith.addf %10, %11 : vector<8x8xf32>
    %cst = arith.constant 0.000000e+00 : f32
    %13 = vector.broadcast %cst : f32 to vector<8x8xf32>
    %14 = arith.cmpf ogt, %12, %13 : vector<8x8xf32>
    %cst_8 = arith.constant 2.000000e-01 : f32
    %15 = vector.broadcast %cst_8 : f32 to vector<8x8xf32>
    %16 = arith.mulf %15, %12 : vector<8x8xf32>
    %17 = arith.select %14, %12, %16 : vector<8x8xi1>, vector<8x8xf32>
    %18 = arith.addf %17, %6 : vector<8x8xf32>
    %c0_9 = arith.constant 0 : index
    %c0_10 = arith.constant 0 : index
    %19 = vector.load %arg8[%c0_9, %c0_10] : memref<8x4xf32, #tpu.memory_space<vmem>>, vector<8x1xf32>
    %c0_11 = arith.constant 0 : index
    %c0_12 = arith.constant 0 : index
    %20 = vector.load %arg9[%c0_11, %c0_12] : memref<8x4xf32, #tpu.memory_space<vmem>>, vector<8x1xf32>
    %cst_13 = arith.constant dense<0xFF800000> : vector<8xf32>
    %21 = vector.multi_reduction <maximumf>, %18, %cst_13 [1] : vector<8x8xf32> to vector<8xf32>
    %22 = vector.shape_cast %21 : vector<8xf32> to vector<8x1xf32>
    %23 = arith.maximumf %19, %22 : vector<8x1xf32>
    %24 = arith.subf %19, %23 : vector<8x1xf32>
    %25 = math.exp %24 : vector<8x1xf32>
    %26 = vector.broadcast %23 : vector<8x1xf32> to vector<8x8xf32>
    %27 = arith.subf %18, %26 : vector<8x8xf32>
    %28 = math.exp %27 : vector<8x8xf32>
    %29 = arith.mulf %25, %20 : vector<8x1xf32>
    %cst_14 = arith.constant dense<0.000000e+00> : vector<8xf32>
    %30 = vector.multi_reduction <add>, %28, %cst_14 [1] : vector<8x8xf32> to vector<8xf32>
    %31 = vector.shape_cast %30 : vector<8xf32> to vector<8x1xf32>
    %32 = arith.addf %29, %31 : vector<8x1xf32>
    %c0_15 = arith.constant 0 : index
    %c0_16 = arith.constant 0 : index
    %33 = vector.load %arg9[%c0_15, %c0_16] : memref<8x4xf32, #tpu.memory_space<vmem>>, vector<8x1xf32>
    tpu.vector_store %arg9[%c0_15, %c0_16], %32 {strides = array<i32>} : memref<8x4xf32, #tpu.memory_space<vmem>>, vector<8x1xf32>,
    %c0_17 = arith.constant 0 : index
    %c0_18 = arith.constant 0 : index
    %34 = vector.load %arg10[%c0_17, %c0_18] : memref<8x128xf32, #tpu.memory_space<vmem>>, vector<8x32xf32>
    %35 = vector.broadcast %25 : vector<8x1xf32> to vector<8x32xf32>
    %36 = arith.mulf %35, %34 : vector<8x32xf32>
    %37 = arith.truncf %28 : vector<8x8xf32> to vector<8x8xbf16>
    %38 = vector.extract_strided_slice %7 {offsets = [0, 0], sizes = [8, 32], strides = [1, 1]} : vector<8x128xbf16> to vector<8x32xbf16>
    %cst_19 = arith.constant dense<0.000000e+00> : vector<8x32xf32>
    %39 = tpu.matmul %37, %38, %cst_19 {dimension_numbers = #tpu.dot_dimension_numbers<[1], [0], [0], [1], [0, 0, 1, 1], [], []>} : vector<8x8xbf16>, vector<8x32xbf16>, vector<8x32xf32> -> vector<8x32xf32>
    %40 = arith.addf %36, %39 : vector<8x32xf32>
    %c0_20 = arith.constant 0 : index
    %c0_21 = arith.constant 0 : index
    %41 = vector.load %arg10[%c0_20, %c0_21] : memref<8x128xf32, #tpu.memory_space<vmem>>, vector<8x32xf32>
    tpu.vector_store %arg10[%c0_20, %c0_21], %40 {strides = array<i32>} : memref<8x128xf32, #tpu.memory_space<vmem>>, vector<8x32xf32>,
    %c0_22 = arith.constant 0 : index
    %c0_23 = arith.constant 0 : index
    %42 = vector.load %arg8[%c0_22, %c0_23] : memref<8x4xf32, #tpu.memory_space<vmem>>, vector<8x1xf32>
    tpu.vector_store %arg8[%c0_22, %c0_23], %23 {strides = array<i32>} : memref<8x4xf32, #tpu.memory_space<vmem>>, vector<8x1xf32>,
    %43 = vector.extract_strided_slice %3 {offsets = [0, 1], sizes = [8, 1], strides = [1, 1]} : vector<8x4xf32> to vector<8x1xf32>
    %44 = vector.extract_strided_slice %4 {offsets = [1, 0], sizes = [1, 8], strides = [1, 1]} : vector<4x8xf32> to vector<1x8xf32>
    %45 = vector.broadcast %43 : vector<8x1xf32> to vector<8x8xf32>
    %46 = vector.broadcast %44 : vector<1x8xf32> to vector<8x8xf32>
    %47 = arith.addf %45, %46 : vector<8x8xf32>
    %cst_24 = arith.constant 0.000000e+00 : f32
    %48 = vector.broadcast %cst_24 : f32 to vector<8x8xf32>
    %49 = arith.cmpf ogt, %47, %48 : vector<8x8xf32>
    %cst_25 = arith.constant 2.000000e-01 : f32
    %50 = vector.broadcast %cst_25 : f32 to vector<8x8xf32>
    %51 = arith.mulf %50, %47 : vector<8x8xf32>
    %52 = arith.select %49, %47, %51 : vector<8x8xi1>, vector<8x8xf32>
    %53 = arith.addf %52, %6 : vector<8x8xf32>
    %c0_26 = arith.constant 0 : index
    %c1 = arith.constant 1 : index
    %54 = vector.load %arg8[%c0_26, %c1] : memref<8x4xf32, #tpu.memory_space<vmem>>, vector<8x1xf32>
    %c0_27 = arith.constant 0 : index
    %c1_28 = arith.constant 1 : index
    %55 = vector.load %arg9[%c0_27, %c1_28] : memref<8x4xf32, #tpu.memory_space<vmem>>, vector<8x1xf32>
    %cst_29 = arith.constant dense<0xFF800000> : vector<8xf32>
    %56 = vector.multi_reduction <maximumf>, %53, %cst_29 [1] : vector<8x8xf32> to vector<8xf32>
    %57 = vector.shape_cast %56 : vector<8xf32> to vector<8x1xf32>
    %58 = arith.maximumf %54, %57 : vector<8x1xf32>
    %59 = arith.subf %54, %58 : vector<8x1xf32>
    %60 = math.exp %59 : vector<8x1xf32>
    %61 = vector.broadcast %58 : vector<8x1xf32> to vector<8x8xf32>
    %62 = arith.subf %53, %61 : vector<8x8xf32>
    %63 = math.exp %62 : vector<8x8xf32>
    %64 = arith.mulf %60, %55 : vector<8x1xf32>
    %cst_30 = arith.constant dense<0.000000e+00> : vector<8xf32>
    %65 = vector.multi_reduction <add>, %63, %cst_30 [1] : vector<8x8xf32> to vector<8xf32>
    %66 = vector.shape_cast %65 : vector<8xf32> to vector<8x1xf32>
    %67 = arith.addf %64, %66 : vector<8x1xf32>
    %c0_31 = arith.constant 0 : index
    %c1_32 = arith.constant 1 : index
    %68 = vector.load %arg9[%c0_31, %c1_32] : memref<8x4xf32, #tpu.memory_space<vmem>>, vector<8x1xf32>
    tpu.vector_store %arg9[%c0_31, %c1_32], %67 {strides = array<i32>} : memref<8x4xf32, #tpu.memory_space<vmem>>, vector<8x1xf32>,
    %c0_33 = arith.constant 0 : index
    %c32 = arith.constant 32 : index
    %69 = vector.load %arg10[%c0_33, %c32] : memref<8x128xf32, #tpu.memory_space<vmem>>, vector<8x32xf32>
    %70 = vector.broadcast %60 : vector<8x1xf32> to vector<8x32xf32>
    %71 = arith.mulf %70, %69 : vector<8x32xf32>
    %72 = arith.truncf %63 : vector<8x8xf32> to vector<8x8xbf16>
    %73 = vector.extract_strided_slice %7 {offsets = [0, 32], sizes = [8, 32], strides = [1, 1]} : vector<8x128xbf16> to vector<8x32xbf16>
    %cst_34 = arith.constant dense<0.000000e+00> : vector<8x32xf32>
    %74 = tpu.matmul %72, %73, %cst_34 {dimension_numbers = #tpu.dot_dimension_numbers<[1], [0], [0], [1], [0, 0, 1, 1], [], []>} : vector<8x8xbf16>, vector<8x32xbf16>, vector<8x32xf32> -> vector<8x32xf32>
    %75 = arith.addf %71, %74 : vector<8x32xf32>
    %c0_35 = arith.constant 0 : index
    %c32_36 = arith.constant 32 : index
    %76 = vector.load %arg10[%c0_35, %c32_36] : memref<8x128xf32, #tpu.memory_space<vmem>>, vector<8x32xf32>
    tpu.vector_store %arg10[%c0_35, %c32_36], %75 {strides = array<i32>} : memref<8x128xf32, #tpu.memory_space<vmem>>, vector<8x32xf32>,
    %c0_37 = arith.constant 0 : index
    %c1_38 = arith.constant 1 : index
    %77 = vector.load %arg8[%c0_37, %c1_38] : memref<8x4xf32, #tpu.memory_space<vmem>>, vector<8x1xf32>
    tpu.vector_store %arg8[%c0_37, %c1_38], %58 {strides = array<i32>} : memref<8x4xf32, #tpu.memory_space<vmem>>, vector<8x1xf32>,
    %78 = vector.extract_strided_slice %3 {offsets = [0, 2], sizes = [8, 1], strides = [1, 1]} : vector<8x4xf32> to vector<8x1xf32>
    %79 = vector.extract_strided_slice %4 {offsets = [2, 0], sizes = [1, 8], strides = [1, 1]} : vector<4x8xf32> to vector<1x8xf32>
    %80 = vector.broadcast %78 : vector<8x1xf32> to vector<8x8xf32>
    %81 = vector.broadcast %79 : vector<1x8xf32> to vector<8x8xf32>
    %82 = arith.addf %80, %81 : vector<8x8xf32>
    %cst_39 = arith.constant 0.000000e+00 : f32
    %83 = vector.broadcast %cst_39 : f32 to vector<8x8xf32>
    %84 = arith.cmpf ogt, %82, %83 : vector<8x8xf32>
    %cst_40 = arith.constant 2.000000e-01 : f32
    %85 = vector.broadcast %cst_40 : f32 to vector<8x8xf32>
    %86 = arith.mulf %85, %82 : vector<8x8xf32>
    %87 = arith.select %84, %82, %86 : vector<8x8xi1>, vector<8x8xf32>
    %88 = arith.addf %87, %6 : vector<8x8xf32>
    %c0_41 = arith.constant 0 : index
    %c2 = arith.constant 2 : index
    %89 = vector.load %arg8[%c0_41, %c2] : memref<8x4xf32, #tpu.memory_space<vmem>>, vector<8x1xf32>
    %c0_42 = arith.constant 0 : index
    %c2_43 = arith.constant 2 : index
    %90 = vector.load %arg9[%c0_42, %c2_43] : memref<8x4xf32, #tpu.memory_space<vmem>>, vector<8x1xf32>
    %cst_44 = arith.constant dense<0xFF800000> : vector<8xf32>
    %91 = vector.multi_reduction <maximumf>, %88, %cst_44 [1] : vector<8x8xf32> to vector<8xf32>
    %92 = vector.shape_cast %91 : vector<8xf32> to vector<8x1xf32>
    %93 = arith.maximumf %89, %92 : vector<8x1xf32>
    %94 = arith.subf %89, %93 : vector<8x1xf32>
    %95 = math.exp %94 : vector<8x1xf32>
    %96 = vector.broadcast %93 : vector<8x1xf32> to vector<8x8xf32>
    %97 = arith.subf %88, %96 : vector<8x8xf32>
    %98 = math.exp %97 : vector<8x8xf32>
    %99 = arith.mulf %95, %90 : vector<8x1xf32>
    %cst_45 = arith.constant dense<0.000000e+00> : vector<8xf32>
    %100 = vector.multi_reduction <add>, %98, %cst_45 [1] : vector<8x8xf32> to vector<8xf32>
    %101 = vector.shape_cast %100 : vector<8xf32> to vector<8x1xf32>
    %102 = arith.addf %99, %101 : vector<8x1xf32>
    %c0_46 = arith.constant 0 : index
    %c2_47 = arith.constant 2 : index
    %103 = vector.load %arg9[%c0_46, %c2_47] : memref<8x4xf32, #tpu.memory_space<vmem>>, vector<8x1xf32>
    tpu.vector_store %arg9[%c0_46, %c2_47], %102 {strides = array<i32>} : memref<8x4xf32, #tpu.memory_space<vmem>>, vector<8x1xf32>,
    %c0_48 = arith.constant 0 : index
    %c64 = arith.constant 64 : index
    %104 = vector.load %arg10[%c0_48, %c64] : memref<8x128xf32, #tpu.memory_space<vmem>>, vector<8x32xf32>
    %105 = vector.broadcast %95 : vector<8x1xf32> to vector<8x32xf32>
    %106 = arith.mulf %105, %104 : vector<8x32xf32>
    %107 = arith.truncf %98 : vector<8x8xf32> to vector<8x8xbf16>
    %108 = vector.extract_strided_slice %7 {offsets = [0, 64], sizes = [8, 32], strides = [1, 1]} : vector<8x128xbf16> to vector<8x32xbf16>
    %cst_49 = arith.constant dense<0.000000e+00> : vector<8x32xf32>
    %109 = tpu.matmul %107, %108, %cst_49 {dimension_numbers = #tpu.dot_dimension_numbers<[1], [0], [0], [1], [0, 0, 1, 1], [], []>} : vector<8x8xbf16>, vector<8x32xbf16>, vector<8x32xf32> -> vector<8x32xf32>
    %110 = arith.addf %106, %109 : vector<8x32xf32>
    %c0_50 = arith.constant 0 : index
    %c64_51 = arith.constant 64 : index
    %111 = vector.load %arg10[%c0_50, %c64_51] : memref<8x128xf32, #tpu.memory_space<vmem>>, vector<8x32xf32>
    tpu.vector_store %arg10[%c0_50, %c64_51], %110 {strides = array<i32>} : memref<8x128xf32, #tpu.memory_space<vmem>>, vector<8x32xf32>,
    %c0_52 = arith.constant 0 : index
    %c2_53 = arith.constant 2 : index
    %112 = vector.load %arg8[%c0_52, %c2_53] : memref<8x4xf32, #tpu.memory_space<vmem>>, vector<8x1xf32>
    tpu.vector_store %arg8[%c0_52, %c2_53], %93 {strides = array<i32>} : memref<8x4xf32, #tpu.memory_space<vmem>>, vector<8x1xf32>,
    %113 = vector.extract_strided_slice %3 {offsets = [0, 3], sizes = [8, 1], strides = [1, 1]} : vector<8x4xf32> to vector<8x1xf32>
    %114 = vector.extract_strided_slice %4 {offsets = [3, 0], sizes = [1, 8], strides = [1, 1]} : vector<4x8xf32> to vector<1x8xf32>
    %115 = vector.broadcast %113 : vector<8x1xf32> to vector<8x8xf32>
    %116 = vector.broadcast %114 : vector<1x8xf32> to vector<8x8xf32>
    %117 = arith.addf %115, %116 : vector<8x8xf32>
    %cst_54 = arith.constant 0.000000e+00 : f32
    %118 = vector.broadcast %cst_54 : f32 to vector<8x8xf32>
    %119 = arith.cmpf ogt, %117, %118 : vector<8x8xf32>
    %cst_55 = arith.constant 2.000000e-01 : f32
    %120 = vector.broadcast %cst_55 : f32 to vector<8x8xf32>
    %121 = arith.mulf %120, %117 : vector<8x8xf32>
    %122 = arith.select %119, %117, %121 : vector<8x8xi1>, vector<8x8xf32>
    %123 = arith.addf %122, %6 : vector<8x8xf32>
    %c0_56 = arith.constant 0 : index
    %c3 = arith.constant 3 : index
    %124 = vector.load %arg8[%c0_56, %c3] : memref<8x4xf32, #tpu.memory_space<vmem>>, vector<8x1xf32>
    %c0_57 = arith.constant 0 : index
    %c3_58 = arith.constant 3 : index
    %125 = vector.load %arg9[%c0_57, %c3_58] : memref<8x4xf32, #tpu.memory_space<vmem>>, vector<8x1xf32>
    %cst_59 = arith.constant dense<0xFF800000> : vector<8xf32>
    %126 = vector.multi_reduction <maximumf>, %123, %cst_59 [1] : vector<8x8xf32> to vector<8xf32>
    %127 = vector.shape_cast %126 : vector<8xf32> to vector<8x1xf32>
    %128 = arith.maximumf %124, %127 : vector<8x1xf32>
    %129 = arith.subf %124, %128 : vector<8x1xf32>
    %130 = math.exp %129 : vector<8x1xf32>
    %131 = vector.broadcast %128 : vector<8x1xf32> to vector<8x8xf32>
    %132 = arith.subf %123, %131 : vector<8x8xf32>
    %133 = math.exp %132 : vector<8x8xf32>
    %134 = arith.mulf %130, %125 : vector<8x1xf32>
    %cst_60 = arith.constant dense<0.000000e+00> : vector<8xf32>
    %135 = vector.multi_reduction <add>, %133, %cst_60 [1] : vector<8x8xf32> to vector<8xf32>
    %136 = vector.shape_cast %135 : vector<8xf32> to vector<8x1xf32>
    %137 = arith.addf %134, %136 : vector<8x1xf32>
    %c0_61 = arith.constant 0 : index
    %c3_62 = arith.constant 3 : index
    %138 = vector.load %arg9[%c0_61, %c3_62] : memref<8x4xf32, #tpu.memory_space<vmem>>, vector<8x1xf32>
    tpu.vector_store %arg9[%c0_61, %c3_62], %137 {strides = array<i32>} : memref<8x4xf32, #tpu.memory_space<vmem>>, vector<8x1xf32>,
    %c0_63 = arith.constant 0 : index
    %c96 = arith.constant 96 : index
    %139 = vector.load %arg10[%c0_63, %c96] : memref<8x128xf32, #tpu.memory_space<vmem>>, vector<8x32xf32>
    %140 = vector.broadcast %130 : vector<8x1xf32> to vector<8x32xf32>
    %141 = arith.mulf %140, %139 : vector<8x32xf32>
    %142 = arith.truncf %133 : vector<8x8xf32> to vector<8x8xbf16>
    %143 = vector.extract_strided_slice %7 {offsets = [0, 96], sizes = [8, 32], strides = [1, 1]} : vector<8x128xbf16> to vector<8x32xbf16>
    %cst_64 = arith.constant dense<0.000000e+00> : vector<8x32xf32>
    %144 = tpu.matmul %142, %143, %cst_64 {dimension_numbers = #tpu.dot_dimension_numbers<[1], [0], [0], [1], [0, 0, 1, 1], [], []>} : vector<8x8xbf16>, vector<8x32xbf16>, vector<8x32xf32> -> vector<8x32xf32>
    %145 = arith.addf %141, %144 : vector<8x32xf32>
    %c0_65 = arith.constant 0 : index
    %c96_66 = arith.constant 96 : index
    %146 = vector.load %arg10[%c0_65, %c96_66] : memref<8x128xf32, #tpu.memory_space<vmem>>, vector<8x32xf32>
    tpu.vector_store %arg10[%c0_65, %c96_66], %145 {strides = array<i32>} : memref<8x128xf32, #tpu.memory_space<vmem>>, vector<8x32xf32>,
    %c0_67 = arith.constant 0 : index
    %c3_68 = arith.constant 3 : index
    %147 = vector.load %arg8[%c0_67, %c3_68] : memref<8x4xf32, #tpu.memory_space<vmem>>, vector<8x1xf32>
    tpu.vector_store %arg8[%c0_67, %c3_68], %128 {strides = array<i32>} : memref<8x4xf32, #tpu.memory_space<vmem>>, vector<8x1xf32>,
    %c0_i32_69 = arith.constant 0 : i32
    %148 = arith.cmpi eq, %arg1, %c0_i32_69 : i32
    %149 = arith.extui %148 : i1 to i32
    %c0_i32_70 = arith.constant 0 : i32
    %150 = arith.cmpi ne, %149, %c0_i32_70 : i32
    scf.if %150 {
      %c0_71 = arith.constant 0 : index
      %c0_72 = arith.constant 0 : index
      %151 = vector.load %arg9[%c0_71, %c0_72] : memref<8x4xf32, #tpu.memory_space<vmem>>, vector<8x1xf32>
      %cst_73 = arith.constant 1.000000e-30 : f32
      %152 = vector.broadcast %cst_73 : f32 to vector<8x1xf32>
      %153 = arith.maximumf %151, %152 : vector<8x1xf32>
      %154 = tpu.reciprocal %153 {approx = true} : vector<8x1xf32> -> vector<8x1xf32>
      %c0_74 = arith.constant 0 : index
      %c0_75 = arith.constant 0 : index
      %155 = vector.load %arg10[%c0_74, %c0_75] : memref<8x128xf32, #tpu.memory_space<vmem>>, vector<8x32xf32>
      %156 = vector.broadcast %154 : vector<8x1xf32> to vector<8x32xf32>
      %157 = arith.mulf %155, %156 : vector<8x32xf32>
      %c0_76 = arith.constant 0 : index
      %c1_77 = arith.constant 1 : index
      %158 = vector.load %arg9[%c0_76, %c1_77] : memref<8x4xf32, #tpu.memory_space<vmem>>, vector<8x1xf32>
      %cst_78 = arith.constant 1.000000e-30 : f32
      %159 = vector.broadcast %cst_78 : f32 to vector<8x1xf32>
      %160 = arith.maximumf %158, %159 : vector<8x1xf32>
      %161 = tpu.reciprocal %160 {approx = true} : vector<8x1xf32> -> vector<8x1xf32>
      %c0_79 = arith.constant 0 : index
      %c32_80 = arith.constant 32 : index
      %162 = vector.load %arg10[%c0_79, %c32_80] : memref<8x128xf32, #tpu.memory_space<vmem>>, vector<8x32xf32>
      %163 = vector.broadcast %161 : vector<8x1xf32> to vector<8x32xf32>
      %164 = arith.mulf %162, %163 : vector<8x32xf32>
      %c0_81 = arith.constant 0 : index
      %c2_82 = arith.constant 2 : index
      %165 = vector.load %arg9[%c0_81, %c2_82] : memref<8x4xf32, #tpu.memory_space<vmem>>, vector<8x1xf32>
      %cst_83 = arith.constant 1.000000e-30 : f32
      %166 = vector.broadcast %cst_83 : f32 to vector<8x1xf32>
      %167 = arith.maximumf %165, %166 : vector<8x1xf32>
      %168 = tpu.reciprocal %167 {approx = true} : vector<8x1xf32> -> vector<8x1xf32>
      %c0_84 = arith.constant 0 : index
      %c64_85 = arith.constant 64 : index
      %169 = vector.load %arg10[%c0_84, %c64_85] : memref<8x128xf32, #tpu.memory_space<vmem>>, vector<8x32xf32>
      %170 = vector.broadcast %168 : vector<8x1xf32> to vector<8x32xf32>
      %171 = arith.mulf %169, %170 : vector<8x32xf32>
      %c0_86 = arith.constant 0 : index
      %c3_87 = arith.constant 3 : index
      %172 = vector.load %arg9[%c0_86, %c3_87] : memref<8x4xf32, #tpu.memory_space<vmem>>, vector<8x1xf32>
      %cst_88 = arith.constant 1.000000e-30 : f32
      %173 = vector.broadcast %cst_88 : f32 to vector<8x1xf32>
      %174 = arith.maximumf %172, %173 : vector<8x1xf32>
      %175 = tpu.reciprocal %174 {approx = true} : vector<8x1xf32> -> vector<8x1xf32>
      %c0_89 = arith.constant 0 : index
      %c96_90 = arith.constant 96 : index
      %176 = vector.load %arg10[%c0_89, %c96_90] : memref<8x128xf32, #tpu.memory_space<vmem>>, vector<8x32xf32>
      %177 = vector.broadcast %175 : vector<8x1xf32> to vector<8x32xf32>
      %178 = arith.mulf %176, %177 : vector<8x32xf32>
      %179 = tpu.concatenate %157, %164, %171, %178 in 1 : vector<8x32xf32>, vector<8x32xf32>, vector<8x32xf32>, vector<8x32xf32> -> vector<8x128xf32>
      %c0_91 = arith.constant 0 : index
      %c0_92 = arith.constant 0 : index
      %180 = vector.load %arg6[%c0_91, %c0_92] : memref<1x128xf32, #tpu.memory_space<vmem>>, vector<1x128xf32>
      %181 = vector.broadcast %180 : vector<1x128xf32> to vector<8x128xf32>
      %182 = arith.addf %179, %181 : vector<8x128xf32>
      %cst_93 = arith.constant 0.000000e+00 : f32
      %183 = vector.broadcast %cst_93 : f32 to vector<8x128xf32>
      %184 = arith.cmpf ogt, %182, %183 : vector<8x128xf32>
      %cst_94 = arith.constant 0.000000e+00 : f32
      %185 = vector.broadcast %cst_94 : f32 to vector<8x128xf32>
      %186 = arith.minimumf %182, %185 : vector<8x128xf32>
      %187 = math.exp %186 : vector<8x128xf32>
      %cst_95 = arith.constant 1.000000e+00 : f32
      %188 = vector.broadcast %cst_95 : f32 to vector<8x128xf32>
      %189 = arith.subf %187, %188 : vector<8x128xf32>
      %190 = arith.select %184, %182, %189 : vector<8x128xi1>, vector<8x128xf32>
      %191 = arith.truncf %190 : vector<8x128xf32> to vector<8x128xbf16>
      %c0_96 = arith.constant 0 : index
      %c0_97 = arith.constant 0 : index
      %192 = vector.load %arg7[%c0_96, %c0_97] : memref<8x128xbf16, #tpu.memory_space<vmem>>, vector<8x128xbf16>
      tpu.vector_store %arg7[%c0_96, %c0_97], %191 {strides = array<i32>} : memref<8x128xbf16, #tpu.memory_space<vmem>>, vector<8x128xbf16>,
    } else {
    }
    return
  }
  func.func @transform_0(%arg0: i32, %arg1: i32) -> (i32, i32) {
    %c0_i32 = arith.constant 0 : i32
    %c0_i32_0 = arith.constant 0 : i32
    return %arg0, %c0_i32 : i32, i32
  }
  func.func @transform_1(%arg0: i32, %arg1: i32) -> (i32, i32) {
    %c0_i32 = arith.constant 0 : i32
    %c0_i32_0 = arith.constant 0 : i32
    return %c0_i32, %arg1 : i32, i32
  }
  func.func @transform_2(%arg0: i32, %arg1: i32) -> (i32, i32) {
    %c0_i32 = arith.constant 0 : i32
    %c0_i32_0 = arith.constant 0 : i32
    return %arg1, %c0_i32 : i32, i32
  }
  func.func @transform_3(%arg0: i32, %arg1: i32) -> (i32, i32) {
    %c0_i32 = arith.constant 0 : i32
    return %arg0, %arg1 : i32, i32
  }
  func.func @transform_4(%arg0: i32, %arg1: i32) -> (i32, i32) {
    %c0_i32 = arith.constant 0 : i32
    %c0_i32_0 = arith.constant 0 : i32
    %c0_i32_1 = arith.constant 0 : i32
    return %c0_i32, %c0_i32_0 : i32, i32
  }
  func.func @transform_5(%arg0: i32, %arg1: i32) -> (i32, i32) {
    %c0_i32 = arith.constant 0 : i32
    %c0_i32_0 = arith.constant 0 : i32
    return %arg0, %c0_i32 : i32, i32
  }
}

module attributes {stable_mosaic.version = 11 : i64} {
  func.func @_gat_attn_kernel(%arg0: i32, %arg1: i32, %arg2: memref<8x1xf32, #tpu.memory_space<vmem>>, %arg3: memref<1x8xf32, #tpu.memory_space<vmem>>, %arg4: memref<8x128xbf16, #tpu.memory_space<vmem>>, %arg5: memref<8x8xbf16, #tpu.memory_space<vmem>>, %arg6: memref<1x128xf32, #tpu.memory_space<vmem>>, %arg7: memref<8x128xf32, #tpu.memory_space<vmem>>, %arg8: memref<8x1xf32, #tpu.memory_space<vmem>>, %arg9: memref<8x1xf32, #tpu.memory_space<vmem>>, %arg10: memref<8x128xf32, #tpu.memory_space<vmem>>) attributes {dimension_semantics = [#tpu.dimension_semantics<parallel>, #tpu.dimension_semantics<arbitrary>], iteration_bounds = array<i64: 1, 1>, scalar_prefetch = 0 : i64, scratch_operands = 3 : i64, tpu.core_type = #tpu.core_type<tc>, window_params = [{transform_indices = @transform_0, window_bounds = array<i64: 8, 1>}, {transform_indices = @transform_1, window_bounds = array<i64: 1, 8>}, {transform_indices = @transform_2, window_bounds = array<i64: 8, 128>}, {transform_indices = @transform_3, window_bounds = array<i64: 8, 8>}, {pipeline_mode = #tpu.pipeline_mode<synchronous>, transform_indices = @transform_4, window_bounds = array<i64: 1, 128>}, {transform_indices = @transform_5, window_bounds = array<i64: 8, 128>}]} {
    %c0_i32 = arith.constant 0 : i32
    %0 = arith.cmpi eq, %arg1, %c0_i32 : i32
    %1 = arith.extui %0 : i1 to i32
    %c0_i32_0 = arith.constant 0 : i32
    %2 = arith.cmpi ne, %1, %c0_i32_0 : i32
    scf.if %2 {
      %cst_26 = arith.constant -1.000000e+30 : f32
      %43 = vector.broadcast %cst_26 : f32 to vector<8x1xf32>
      %c0_27 = arith.constant 0 : index
      %c0_28 = arith.constant 0 : index
      %44 = vector.load %arg8[%c0_27, %c0_28] : memref<8x1xf32, #tpu.memory_space<vmem>>, vector<8x1xf32>
      tpu.vector_store %arg8[%c0_27, %c0_28], %43 {strides = array<i32>} : memref<8x1xf32, #tpu.memory_space<vmem>>, vector<8x1xf32>,
      %cst_29 = arith.constant 0.000000e+00 : f32
      %45 = vector.broadcast %cst_29 : f32 to vector<8x1xf32>
      %c0_30 = arith.constant 0 : index
      %c0_31 = arith.constant 0 : index
      %46 = vector.load %arg9[%c0_30, %c0_31] : memref<8x1xf32, #tpu.memory_space<vmem>>, vector<8x1xf32>
      tpu.vector_store %arg9[%c0_30, %c0_31], %45 {strides = array<i32>} : memref<8x1xf32, #tpu.memory_space<vmem>>, vector<8x1xf32>,
      %cst_32 = arith.constant 0.000000e+00 : f32
      %47 = vector.broadcast %cst_32 : f32 to vector<8x128xf32>
      %c0_33 = arith.constant 0 : index
      %c0_34 = arith.constant 0 : index
      %48 = vector.load %arg10[%c0_33, %c0_34] : memref<8x128xf32, #tpu.memory_space<vmem>>, vector<8x128xf32>
      tpu.vector_store %arg10[%c0_33, %c0_34], %47 {strides = array<i32>} : memref<8x128xf32, #tpu.memory_space<vmem>>, vector<8x128xf32>,
    } else {
    }
    %c0 = arith.constant 0 : index
    %c0_1 = arith.constant 0 : index
    %3 = vector.load %arg2[%c0, %c0_1] : memref<8x1xf32, #tpu.memory_space<vmem>>, vector<8x1xf32>
    %c0_2 = arith.constant 0 : index
    %c0_3 = arith.constant 0 : index
    %4 = vector.load %arg3[%c0_2, %c0_3] : memref<1x8xf32, #tpu.memory_space<vmem>>, vector<1x8xf32>
    %c0_4 = arith.constant 0 : index
    %c0_5 = arith.constant 0 : index
    %5 = vector.load %arg5[%c0_4, %c0_5] : memref<8x8xbf16, #tpu.memory_space<vmem>>, vector<8x8xbf16>
    %6 = arith.extf %5 : vector<8x8xbf16> to vector<8x8xf32>
    %c0_6 = arith.constant 0 : index
    %c0_7 = arith.constant 0 : index
    %7 = vector.load %arg4[%c0_6, %c0_7] : memref<8x128xbf16, #tpu.memory_space<vmem>>, vector<8x128xbf16>
    %8 = vector.broadcast %3 : vector<8x1xf32> to vector<8x8xf32>
    %9 = vector.broadcast %4 : vector<1x8xf32> to vector<8x8xf32>
    %10 = arith.addf %8, %9 : vector<8x8xf32>
    %cst = arith.constant 0.000000e+00 : f32
    %11 = vector.broadcast %cst : f32 to vector<8x8xf32>
    %12 = arith.cmpf ogt, %10, %11 : vector<8x8xf32>
    %cst_8 = arith.constant 2.000000e-01 : f32
    %13 = vector.broadcast %cst_8 : f32 to vector<8x8xf32>
    %14 = arith.mulf %13, %10 : vector<8x8xf32>
    %15 = arith.select %12, %10, %14 : vector<8x8xi1>, vector<8x8xf32>
    %16 = arith.addf %15, %6 : vector<8x8xf32>
    %c0_9 = arith.constant 0 : index
    %c0_10 = arith.constant 0 : index
    %17 = vector.load %arg8[%c0_9, %c0_10] : memref<8x1xf32, #tpu.memory_space<vmem>>, vector<8x1xf32>
    %c0_11 = arith.constant 0 : index
    %c0_12 = arith.constant 0 : index
    %18 = vector.load %arg9[%c0_11, %c0_12] : memref<8x1xf32, #tpu.memory_space<vmem>>, vector<8x1xf32>
    %cst_13 = arith.constant dense<0xFF800000> : vector<8xf32>
    %19 = vector.multi_reduction <maximumf>, %16, %cst_13 [1] : vector<8x8xf32> to vector<8xf32>
    %20 = vector.shape_cast %19 : vector<8xf32> to vector<8x1xf32>
    %21 = arith.maximumf %17, %20 : vector<8x1xf32>
    %22 = arith.subf %17, %21 : vector<8x1xf32>
    %23 = math.exp %22 : vector<8x1xf32>
    %24 = vector.broadcast %21 : vector<8x1xf32> to vector<8x8xf32>
    %25 = arith.subf %16, %24 : vector<8x8xf32>
    %26 = math.exp %25 : vector<8x8xf32>
    %27 = arith.mulf %23, %18 : vector<8x1xf32>
    %cst_14 = arith.constant dense<0.000000e+00> : vector<8xf32>
    %28 = vector.multi_reduction <add>, %26, %cst_14 [1] : vector<8x8xf32> to vector<8xf32>
    %29 = vector.shape_cast %28 : vector<8xf32> to vector<8x1xf32>
    %30 = arith.addf %27, %29 : vector<8x1xf32>
    %c0_15 = arith.constant 0 : index
    %c0_16 = arith.constant 0 : index
    %31 = vector.load %arg9[%c0_15, %c0_16] : memref<8x1xf32, #tpu.memory_space<vmem>>, vector<8x1xf32>
    tpu.vector_store %arg9[%c0_15, %c0_16], %30 {strides = array<i32>} : memref<8x1xf32, #tpu.memory_space<vmem>>, vector<8x1xf32>,
    %c0_17 = arith.constant 0 : index
    %c0_18 = arith.constant 0 : index
    %32 = vector.load %arg10[%c0_17, %c0_18] : memref<8x128xf32, #tpu.memory_space<vmem>>, vector<8x128xf32>
    %33 = vector.broadcast %23 : vector<8x1xf32> to vector<8x128xf32>
    %34 = arith.mulf %33, %32 : vector<8x128xf32>
    %35 = arith.truncf %26 : vector<8x8xf32> to vector<8x8xbf16>
    %cst_19 = arith.constant dense<0.000000e+00> : vector<8x128xf32>
    %36 = tpu.matmul %35, %7, %cst_19 {dimension_numbers = #tpu.dot_dimension_numbers<[1], [0], [0], [1], [0, 0, 1, 1], [], []>} : vector<8x8xbf16>, vector<8x128xbf16>, vector<8x128xf32> -> vector<8x128xf32>
    %37 = arith.addf %34, %36 : vector<8x128xf32>
    %c0_20 = arith.constant 0 : index
    %c0_21 = arith.constant 0 : index
    %38 = vector.load %arg10[%c0_20, %c0_21] : memref<8x128xf32, #tpu.memory_space<vmem>>, vector<8x128xf32>
    tpu.vector_store %arg10[%c0_20, %c0_21], %37 {strides = array<i32>} : memref<8x128xf32, #tpu.memory_space<vmem>>, vector<8x128xf32>,
    %c0_22 = arith.constant 0 : index
    %c0_23 = arith.constant 0 : index
    %39 = vector.load %arg8[%c0_22, %c0_23] : memref<8x1xf32, #tpu.memory_space<vmem>>, vector<8x1xf32>
    tpu.vector_store %arg8[%c0_22, %c0_23], %21 {strides = array<i32>} : memref<8x1xf32, #tpu.memory_space<vmem>>, vector<8x1xf32>,
    %c0_i32_24 = arith.constant 0 : i32
    %40 = arith.cmpi eq, %arg1, %c0_i32_24 : i32
    %41 = arith.extui %40 : i1 to i32
    %c0_i32_25 = arith.constant 0 : i32
    %42 = arith.cmpi ne, %41, %c0_i32_25 : i32
    scf.if %42 {
      %c0_26 = arith.constant 0 : index
      %c0_27 = arith.constant 0 : index
      %43 = vector.load %arg9[%c0_26, %c0_27] : memref<8x1xf32, #tpu.memory_space<vmem>>, vector<8x1xf32>
      %cst_28 = arith.constant 1.000000e-30 : f32
      %44 = vector.broadcast %cst_28 : f32 to vector<8x1xf32>
      %45 = arith.maximumf %43, %44 : vector<8x1xf32>
      %46 = tpu.reciprocal %45 {approx = true} : vector<8x1xf32> -> vector<8x1xf32>
      %c0_29 = arith.constant 0 : index
      %c0_30 = arith.constant 0 : index
      %47 = vector.load %arg10[%c0_29, %c0_30] : memref<8x128xf32, #tpu.memory_space<vmem>>, vector<8x128xf32>
      %48 = vector.broadcast %46 : vector<8x1xf32> to vector<8x128xf32>
      %49 = arith.mulf %47, %48 : vector<8x128xf32>
      %c0_31 = arith.constant 0 : index
      %c0_32 = arith.constant 0 : index
      %50 = vector.load %arg6[%c0_31, %c0_32] : memref<1x128xf32, #tpu.memory_space<vmem>>, vector<1x128xf32>
      %51 = vector.broadcast %50 : vector<1x128xf32> to vector<8x128xf32>
      %52 = arith.addf %49, %51 : vector<8x128xf32>
      %c0_33 = arith.constant 0 : index
      %c0_34 = arith.constant 0 : index
      %53 = vector.load %arg7[%c0_33, %c0_34] : memref<8x128xf32, #tpu.memory_space<vmem>>, vector<8x128xf32>
      tpu.vector_store %arg7[%c0_33, %c0_34], %52 {strides = array<i32>} : memref<8x128xf32, #tpu.memory_space<vmem>>, vector<8x128xf32>,
    } else {
    }
    return
  }
  func.func @transform_0(%arg0: i32, %arg1: i32) -> (i32, i32) {
    %c0_i32 = arith.constant 0 : i32
    %c0_i32_0 = arith.constant 0 : i32
    return %arg0, %c0_i32 : i32, i32
  }
  func.func @transform_1(%arg0: i32, %arg1: i32) -> (i32, i32) {
    %c0_i32 = arith.constant 0 : i32
    %c0_i32_0 = arith.constant 0 : i32
    return %c0_i32, %arg1 : i32, i32
  }
  func.func @transform_2(%arg0: i32, %arg1: i32) -> (i32, i32) {
    %c0_i32 = arith.constant 0 : i32
    %c0_i32_0 = arith.constant 0 : i32
    return %arg1, %c0_i32 : i32, i32
  }
  func.func @transform_3(%arg0: i32, %arg1: i32) -> (i32, i32) {
    %c0_i32 = arith.constant 0 : i32
    return %arg0, %arg1 : i32, i32
  }
  func.func @transform_4(%arg0: i32, %arg1: i32) -> (i32, i32) {
    %c0_i32 = arith.constant 0 : i32
    %c0_i32_0 = arith.constant 0 : i32
    %c0_i32_1 = arith.constant 0 : i32
    return %c0_i32, %c0_i32_0 : i32, i32
  }
  func.func @transform_5(%arg0: i32, %arg1: i32) -> (i32, i32) {
    %c0_i32 = arith.constant 0 : i32
    %c0_i32_0 = arith.constant 0 : i32
    return %arg0, %c0_i32 : i32, i32
  }
}

</mosaic_0001>

<bundles_post_ra>
// kernel: gat_forward.4
= control target key start
LH: loop header
LB: loop body
LE: loop exit
PB: predicated region body
PF: predicated region fallthrough
CT: control target
= control target key end

     0   :  { %vm30_vm0 = vcmask 130048   ;;  %v217_v0 = vmov 0.0   ;;  %vm218_vm1 = vmmov 0   ;;  %vm120_vm2 = vcmask 60416   ;;  %s279_s1 = inlined_call_operand.vmem [shape: bf16[16,128], index: 1, kind: input, shape index: {}]   ;;  %s280_s0 = inlined_call_operand.vmem [shape: bf16[8,16], index: 0, kind: input, shape index: {}]   ;;  %s281_s3 = inlined_call_operand.vmem [shape: bf16[16,4], index: 3, kind: input, shape index: {}]   ;;  %s282_s2 = inlined_call_operand.vmem [shape: bf16[4,16], index: 2, kind: input, shape index: {}]   ;;  %s283_s4 = inlined_call_operand.vmem [shape: bf16[8,128], index: 4, kind: output, shape index: {0}]   ;;  %s284_s5 = inlined_call_operand.vmem [shape: f32[4,8], index: 5, kind: output, shape index: {1}]   ;;  %s285_s6 = inlined_call_operand.vmem [shape: f32[8,4], index: 6, kind: output, shape index: {2}]  }
   0x1   :  { %195 = vmatprep.subr.bf16.mxu0 %v217_v0  ;;  %v215_v1 = vld [vmem:[%s279_s1] sm:$0xff]   ;;  %201 = vmatprep.subr.bf16.mxu1 %v217_v0  ;;  %vm170_vm3 = vcmask 31744  }
   0x2   :  { %197 = vmatprep.mubr.msk.bf16.mxu0 %vm218_vm1, %v217_v0  ;;  %v21_v2 = vld [vmem:[%s280_s0] sm:$0xf]  ;;  %203 = vmatprep.mubr.msk.bf16.mxu1 %vm218_vm1, %v217_v0 }
   0x3   :  { %196 = vmatpush3.bf16.msra.mxu0 %v215_v1  ;;  %v32_v3 = vsel %vm30_vm0, %v21_v2, 0  ;;  %v216_v4 = vld [vmem:[%s281_s3] sm:$0xff]  }
   0x4   :  { %202 = vmatpush3.bf16.xpose.msra.mxu1 %v32_v3  ;;  %207 = vmatprep.subr.bf16.mxu0 %v217_v0  ;;  %v76_v5 = vld [vmem:[%s282_s2] sm:$0x3] }
   0x6   :  { %198 = vmatmul.mubr.msk.bf16.vlgmr.msra.gmra.mrb[0].mxu0 %vm30_vm0, %v21_v2 }
   0x7   :  { %208 = vmatpush3.bf16.msra.mxu0 %v216_v4  ;;  %209 = vmatprep.mubr.msk.bf16.mxu0 %vm218_vm1, %v217_v0 }
   0xb   :  { %204 = vmatmul.mubr.msk.bf16.vlgmr.msra.gmra.mrb[0].mxu1 %vm30_vm0, %v76_v5 }
   0xe   :  { %210 = vmatmul.mubr.msk.bf16.vlgmr.msra.gmra.mrb[4].mxu0 %vm30_vm0, %v21_v2 }
  0xd9   :  { %v68_v6 = vpop.f32.mrb[0].mxu0 }
  0xda   :  { %v74_v7 = vpack.c.bf16 %v68_v6, %v68_v6  ;;  %v199_v8 = vpop.f32.mrb[1].mxu0 }
  0xdb   :  { %v71_v9 = vpop.f32.mrb[2].mxu0 }
  0xdc   :  { %75 = vst [vmem:[%s283_s4] sm:$0xf] %v74_v7  ;;  %v200_v10 = vpop.f32.mrb[3].mxu0 }
  0xde   :  { %v114_v11 = vpop.f32.mrb[0].mxu1 }
  0xdf   :  { %121 = vst.msk [vmem:[%s284_s5] sm:$0xf] %vm120_vm2, %v114_v11  ;;  %v205_v12 = vpop.f32.mrb[1].mxu1 }
  0xe0   :  { %v117_v13 = vpop.f32.mrb[2].mxu1 }
  0xe1   :  { %v164_v14 = vpop.f32.mrb[4].mxu0  ;;  %v206_v15 = vpop.f32.mrb[3].mxu1 }
  0xe2   :  { %171 = vst.msk [vmem:[%s285_s6] sm:$0xff] %vm170_vm3, %v164_v14  ;;  %v211_v16 = vpop.f32.mrb[5].mxu0 }
  0xe3   :  { %v167_v17 = vpop.f32.mrb[6].mxu0 }
  0xe4   :  { %v212_v18 = vpop.f32.mrb[7].mxu0 }

// kernel: gat_forward.6
= control target key start
LH: loop header
LB: loop body
LE: loop exit
PB: predicated region body
PF: predicated region fallthrough
CT: control target
= control target key end

     0   :  { %v389_v0 = vmov 0.0   ;;  %vm390_vm0 = vmmov 0   ;;  %vm169_vm1 = vcmask 57344   ;;  %vm275_vm2 = vcmask 7168   ;;  %s492_s0 = inlined_call_operand.vmem [shape: bf16[8,128], index: 0, kind: input, shape index: {}]   ;;  %s493_s1 = inlined_call_operand.vmem [shape: bf16[128,128], index: 1, kind: input, shape index: {}]   ;;  %s494_s3 = inlined_call_operand.vmem [shape: bf16[128,1], index: 3, kind: input, shape index: {}]   ;;  %s495_s2 = inlined_call_operand.vmem [shape: bf16[1,128], index: 2, kind: input, shape index: {}]   ;;  %s496_s5 = inlined_call_operand.vmem [shape: f32[1,8], index: 5, kind: output, shape index: {1}]   ;;  %s497_s4 = inlined_call_operand.vmem [shape: bf16[8,128], index: 4, kind: output, shape index: {0}]   ;;  %s498_s6 = inlined_call_operand.vmem [shape: f32[8,1], index: 6, kind: output, shape index: {2}]  }
   0x1   :  { %345 = vmatprep.subr.bf16.mxu1 %v389_v0  ;;  %v21_v1 = vld [vmem:[%s492_s0] sm:$0xf]  ;;  %325 = vmatprep.subr.bf16.mxu0 %v389_v0  ;;  %v375_v3 = vld [vmem:[%s493_s1 + $0x8] sm:$0xff]   ;;  %v377_v6 = vld [vmem:[%s493_s1 + $0x10] sm:$0xff]  }
   0x2   :  { %346 = vmatpush3.bf16.xpose.msra.mxu1 %v21_v1  ;;  %v373_v2 = vld [vmem:[%s493_s1] sm:$0xff]   ;;  %347 = vmatprep.mubr.msk.bf16.mxu1 %vm390_vm0, %v389_v0  ;;  %v376_v7 = vld [vmem:[%s494_s3 + $0x8] sm:$0xff]   ;;  %v379_v8 = vld [vmem:[%s493_s1 + $0x18] sm:$0xff]  }
   0x3   :  { %351 = vmatprep.subr.bf16.mxu1 %v389_v0  ;;  %341 = vmatprep.mubr.msk.bf16.mxu0 %vm390_vm0, %v389_v0  ;;  %v128_v4 = vld [vmem:[%s495_s2] sm:$0x1]  ;;  %v378_v9 = vld [vmem:[%s494_s3 + $0x10] sm:$0xff]   ;;  %v380_v11 = vld [vmem:[%s494_s3 + $0x18] sm:$0xff]  }
   0x4   :  { %326 = vmatpush3.bf16.msra.mxu0 %v373_v2  ;;  %v374_v5 = vld [vmem:[%s494_s3] sm:$0xff]   ;;  %v383_v12 = vld [vmem:[%s493_s1 + $0x28] sm:$0xff]   ;;  %v385_v14 = vld [vmem:[%s493_s1 + $0x30] sm:$0xff]  }
   0x5   :  { %327 = vmatprep.subr.bf16.mxu0 %v389_v0  ;;  %v381_v10 = vld [vmem:[%s493_s1 + $0x20] sm:$0xff]   ;;  %v384_v15 = vld [vmem:[%s494_s3 + $0x28] sm:$0xff]   ;;  %v387_v16 = vld [vmem:[%s493_s1 + $0x38] sm:$0xff]  }
   0x6   :  { %v382_v13 = vld [vmem:[%s494_s3 + $0x20] sm:$0xff]   ;;  %v386_v17 = vld [vmem:[%s494_s3 + $0x30] sm:$0xff]   ;;  %v388_v18 = vld [vmem:[%s494_s3 + $0x38] sm:$0xff]  }
   0x8   :  { %328 = vmatpush3.bf16.msra.mxu0 %v375_v3 }
   0x9   :  { %348 = vmatmul.mubr.bf16.vlgmr.msra.gmra.mrb[0].mxu1 %v128_v4  ;;  %329 = vmatprep.subr.bf16.mxu0 %v389_v0 }
   0xa   :  { %352 = vmatpush3.bf16.msra.mxu1 %v374_v5  ;;  %367 = vmatprep.mubr.msk.bf16.mxu1 %vm390_vm0, %v389_v0 }
   0xb   :  { %353 = vmatprep.subr.bf16.mxu1 %v389_v0 }
   0xc   :  { %330 = vmatpush3.bf16.msra.mxu0 %v377_v6 }
   0xd   :  { %331 = vmatprep.subr.bf16.mxu0 %v389_v0 }
   0xe   :  { %354 = vmatpush3.bf16.msra.mxu1 %v376_v7 }
   0xf   :  { %355 = vmatprep.subr.bf16.mxu1 %v389_v0 }
  0x10   :  { %332 = vmatpush3.bf16.msra.mxu0 %v379_v8 }
  0x11   :  { %333 = vmatprep.subr.bf16.mxu0 %v389_v0 }
  0x12   :  { %356 = vmatpush3.bf16.msra.mxu1 %v378_v9 }
  0x13   :  { %357 = vmatprep.subr.bf16.mxu1 %v389_v0 }
  0x14   :  { %334 = vmatpush3.bf16.msra.mxu0 %v381_v10 }
  0x15   :  { %335 = vmatprep.subr.bf16.mxu0 %v389_v0 }
  0x16   :  { %358 = vmatpush3.bf16.msra.mxu1 %v380_v11 }
  0x17   :  { %359 = vmatprep.subr.bf16.mxu1 %v389_v0 }
  0x18   :  { %336 = vmatpush3.bf16.msra.mxu0 %v383_v12 }
  0x19   :  { %337 = vmatprep.subr.bf16.mxu0 %v389_v0 }
  0x1a   :  { %360 = vmatpush3.bf16.msra.mxu1 %v382_v13 }
  0x1b   :  { %361 = vmatprep.subr.bf16.mxu1 %v389_v0 }
  0x1c   :  { %338 = vmatpush3.bf16.msra.mxu0 %v385_v14 }
  0x1d   :  { %339 = vmatprep.subr.bf16.mxu0 %v389_v0 }
  0x1e   :  { %362 = vmatpush3.bf16.msra.mxu1 %v384_v15 }
  0x1f   :  { %363 = vmatprep.subr.bf16.mxu1 %v389_v0 }
  0x20   :  { %340 = vmatpush3.bf16.msra.mxu0 %v387_v16 }
  0x22   :  { %364 = vmatpush3.bf16.msra.mxu1 %v386_v17 }
  0x23   :  { %365 = vmatprep.subr.bf16.mxu1 %v389_v0  ;;  %342 = vmatmul.mubr.bf16.vlgmr.msra.gmra.mrb[0].mxu0 %v21_v1 }
  0x26   :  { %366 = vmatpush3.bf16.msra.mxu1 %v388_v18 }
  0x29   :  { %368 = vmatmul.mubr.bf16.vlgmr.msra.gmra.mrb[4].mxu1 %v21_v1 }
  0xdc   :  { %v163_v19 = vpop.f32.mrb[0].mxu1 }
  0xdd   :  { %170 = vst.msk [vmem:[%s496_s5] sm:$0x1] %vm169_vm1, %v163_v19  ;;  %v349_v20 = vpop.f32.mrb[1].mxu1 }
  0xde   :  { %v166_v21 = vpop.f32.mrb[2].mxu1 }
  0xdf   :  { %v350_v22 = vpop.f32.mrb[3].mxu1 }
  0xf6   :  { %v120_v23 = vpop.f32.mrb[0].mxu0 }
  0xf7   :  { %v126_v24 = vpack.c.bf16 %v120_v23, %v120_v23  ;;  %v343_v25 = vpop.f32.mrb[1].mxu0 }
  0xf8   :  { %v123_v26 = vpop.f32.mrb[2].mxu0 }
  0xf9   :  { %127 = vst [vmem:[%s497_s4] sm:$0xf] %v126_v24  ;;  %v344_v27 = vpop.f32.mrb[3].mxu0 }
  0xfc   :  { %v269_v28 = vpop.f32.mrb[4].mxu1 }
  0xfd   :  { %276 = vst.msk [vmem:[%s498_s6] sm:$0xff] %vm275_vm2, %v269_v28  ;;  %v369_v29 = vpop.f32.mrb[5].mxu1 }
  0xfe   :  { %v272_v30 = vpop.f32.mrb[6].mxu1 }
  0xff   :  { %v370_v31 = vpop.f32.mrb[7].mxu1 }

// kernel: gat_forward.7
= control target key start
LH: loop header
LB: loop body
LE: loop exit
PB: predicated region body
PF: predicated region fallthrough
CT: control target
= control target key end

     0   :  { %v182_v0 = vmov 0   ;;  %vm25_vm0 = vcmask 7168   ;;  %v183_v2 = vmov -1e+30   ;;  %vm52_vm2 = vcmask 64512   ;;  %s241_s0 = inlined_call_operand.vmem [shape: f32[8,1], index: 0, kind: input, shape index: {}]   ;;  %s242_s1 = inlined_call_operand.vmem [shape: f32[1,8], index: 1, kind: input, shape index: {}]   ;;  %s243_s3 = inlined_call_operand.vmem [shape: bf16[8,8], index: 3, kind: input, shape index: {}]   ;;  %s244_s2 = inlined_call_operand.vmem [shape: bf16[8,128], index: 2, kind: input, shape index: {}]   ;;  %s245_s4 = inlined_call_operand.vmem [shape: f32[1,128], index: 4, kind: input, shape index: {}]   ;;  %s246_s5 = inlined_call_operand.vmem [shape: f32[8,128], index: 5, kind: output, shape index: {}]  }
   0x1   :  { %174 = vset.pattern.permute.xlu0 %v182_v0  ;;  %v29_v1 = vld [vmem:[%s241_s0] sm:$0xff]  ;;  %175 = vset.pattern.permute.xlu1 %v182_v0  ;;  %26 = vst.msk [vmem:[#allocation2] sm:$0xff] %vm25_vm0, %v183_v2  ;;  %v184_v12 = vmov 0.0   ;;  %vm86_vm3 = vcmask 1043456   ;;  %vm185_vm4 = vmmov 0  }
   0x2   :  { %36 = vperm.xlu0 %174, %v29_v1   ;;  %v159_v3 = vld [vmem:[%s242_s1] ss:$0 sm:$0xff]  ;;  %27 = vst.msk [vmem:[#allocation3] sm:$0xff] %vm25_vm0, %v184_v12  ;;  %164 = vmatprep.subr.bf16.mxu0 %v184_v12 }
   0x3   :  { %v31_v4 = vld [vmem:[%s243_s3] sm:$0xf]  ;;  %166 = vmatprep.mubr.msk.bf16.mxu0 %vm185_vm4, %v184_v12 }
   0x4   :  { %v32_v7 = vunpack.c.l.bf16 %v31_v4  ;;  %v33_v18 = vld [vmem:[%s244_s2] sm:$0xf] }
   0x5   :  { %v88_v19 = vsel %vm86_vm3, %v33_v18, 0  ;;  %v161_v41 = vld [vmem:[%s245_s4] ss:$0 sm:$0xff] }
   0x6   :  { %165 = vmatpush3.bf16.msra.mxu0 %v88_v19 }
   0x8   :  { %v50_v13 = vld [vmem:[#allocation2] sm:$0xff] }
   0x9   :  { %v51_v27 = vld [vmem:[#allocation3] sm:$0xff] }
  0x81   :  { %v37_v5 = vpop.permute.xlu0 %36 }
  0x82   :  { %v45_v6 = vadd.f32 %v159_v3, %v37_v5 }
  0x84   :  { %vm46_vm1 = vcmp.gt.f32.partialorder %v45_v6, 0.0  ;;  %v47_v8 = vmul.f32 0.2, %v45_v6 }
  0x86   :  { %v48_v9 = vsel %vm46_vm1, %v45_v6, %v47_v8 }
  0x87   :  { %v49_v10 = vadd.f32 %v48_v9, %v32_v7 }
  0x89   :  { %v53_v11 = vsel %vm52_vm2, %v49_v10, -inf }
  0x8a   :  { %54 = vmax.xlane.f32.xlu0 %v53_v11 }
 0x117   :  { %v55_v14 = vpop.xlane.xlu0 %54 }
 0x118   :  { %v56_v15 = vmax.f32 %v50_v13, %v55_v14 }
 0x11a   :  { %v57_v16 = vsub.f32 %v50_v13, %v56_v15  ;;  %132 = vst.msk [vmem:[#allocation2] sm:$0xff] %vm25_vm0, %v56_v15  ;;  %62 = vperm.xlu1 %175, %v56_v15  }
 0x11c   :  { %v58_v17 = vmul.f32 1.442695, %v57_v16 }
 0x11e   :  { %176 = vpow2.f32 %v58_v17 }
 0x128   :  { %v177_v20 = vpop.eup %176 }
 0x129   :  { %78 = vperm.xlu0 %174, %v177_v20   ;;  %v68_v28 = vmul.f32 %v177_v20, %v51_v27 }
 0x199   :  { %v63_v21 = vpop.permute.xlu1 %62 }
 0x19a   :  { %v65_v22 = vsub.f32 %v49_v10, %v63_v21 }
 0x19c   :  { %v66_v23 = vmul.f32 1.442695, %v65_v22 }
 0x19e   :  { %178 = vpow2.f32 %v66_v23 }
 0x1a8   :  { %v179_v24 = vpop.eup %178  ;;  %v79_v38 = vpop.permute.xlu0 %78 }
 0x1a9   :  { %v69_v25 = vsel %vm52_vm2, %v179_v24, 0.0  ;;  %v82_v26 = vpack.c.bf16 %v179_v24, %v179_v24  ;;  %v81_v39 = vmul.f32 0.0, %v79_v38 }
 0x1aa   :  { %70 = vadd.xlane.f32.xlu1 %v69_v25 }
 0x1ab   :  { %167 = vmatmul.mubr.msk.bf16.vlgmr.msra.gmra.mrb[0].mxu0 %vm52_vm2, %v82_v26 }
 0x237   :  { %v71_v29 = vpop.xlane.xlu1 %70 }
 0x238   :  { %v72_v30 = vadd.f32 %v71_v29, %v68_v28 }
 0x23a   :  { %74 = vst.msk [vmem:[#allocation3] sm:$0xff] %vm25_vm0, %v72_v30 }
 0x241   :  { %v136_v31 = vld [vmem:[#allocation3] sm:$0xff] }
 0x242   :  { %v137_v32 = vmax.f32 %v136_v31, 1e-30 }
 0x244   :  { %180 = vrcp.f32 %v137_v32 }
 0x24e   :  { %v181_v33 = vpop.eup %180 }
 0x24f   :  { %142 = vperm.xlu1 %175, %v181_v33  }
 0x27e   :  { %v124_v34 = vpop.f32.mrb[0].mxu0 }
 0x27f   :  { %v168_v35 = vpop.f32.mrb[1].mxu0  ;;  %v130_v40 = vadd.f32 %v124_v34, %v81_v39 }
 0x280   :  { %v127_v36 = vpop.f32.mrb[2].mxu0 }
 0x281   :  { %v169_v37 = vpop.f32.mrb[3].mxu0 }
 0x2ce   :  { %v143_v42 = vpop.permute.xlu1 %142 }
 0x2cf   :  { %v145_v43 = vmul.f32 %v143_v42, %v130_v40 }
 0x2d1   :  { %v153_v44 = vadd.f32 %v161_v41, %v145_v43 }
 0x2d3   :  { %154 = vst [vmem:[%s246_s5] sm:$0xff] %v153_v44 }

// kernel: gat_forward.5
= control target key start
LH: loop header
LB: loop body
LE: loop exit
PB: predicated region body
PF: predicated region fallthrough
CT: control target
= control target key end

     0   :  { %v575_v0 = vmov 0   ;;  %v576_v2 = vmov 2   ;;  %v577_v3 = vmov 1   ;;  %v578_v4 = vmov 3   ;;  %s581_s23 = smov 96   ;;  %s584_s24 = smov 32   ;;  %s732_s0 = inlined_call_operand.vmem [shape: f32[8,4], index: 0, kind: input, shape index: {}]   ;;  %s733_s1 = inlined_call_operand.vmem [shape: f32[4,8], index: 1, kind: input, shape index: {}]   ;;  %s734_s3 = inlined_call_operand.vmem [shape: bf16[8,8], index: 3, kind: input, shape index: {}]   ;;  %s735_s2 = inlined_call_operand.vmem [shape: bf16[8,128], index: 2, kind: input, shape index: {}]   ;;  %s736_s4 = inlined_call_operand.vmem [shape: f32[1,128], index: 4, kind: input, shape index: {}]   ;;  %s737_s5 = inlined_call_operand.vmem [shape: bf16[8,128], index: 5, kind: output, shape index: {}]  }
   0x1   :  { %540 = vset.pattern.permute.xlu0 %v575_v0  ;;  %v29_v1 = vld [vmem:[%s732_s0] sm:$0xff]  ;;  %542 = vset.pattern.permute.xlu1 %v576_v2  ;;  %vm25_vm0 = vcmask 31744   ;;  %v579_v5 = vmov -1e+30   ;;  %v39_v6 = vlaneseq  ;;  %vm50_vm2 = vcmask 64512  }
   0x2   :  { %36 = vperm.xlu0 %540, %v29_v1   ;;  %237 = vperm.xlu1 %542, %v29_v1   ;;  %26 = vst.msk [vmem:[#allocation2] sm:$0xff] %vm25_vm0, %v579_v5  ;;  %v30_v10 = vld [vmem:[%s733_s1] sm:$0xf]  ;;  %v580_v43 = vmov 0.0   ;;  %vm71_vm6 = vcmask 7168   ;;  %vm167_vm7 = vcmask 15368  }
   0x3   :  { %v40_v7 = vshrl.u32 %v39_v6, 7  ;;  %v31_v15 = vld [vmem:[%s734_s3] sm:$0xf]  ;;  %506 = vmatprep.subr.bf16.mxu0 %v580_v43  ;;  %27 = vst.msk [vmem:[#allocation3] sm:$0xff] %vm25_vm0, %v580_v43  ;;  %28 = vst [vmem:[#allocation4] sm:$0xff] %v580_v43  ;;  %512 = vmatprep.subr.bf16.mxu1 %v580_v43  ;;  %vm84_vm8 = vcmask 1043456  }
   0x4   :  { %v32_v21 = vunpack.c.l.bf16 %v31_v15  ;;  %v33_v50 = vld [vmem:[%s735_s2] sm:$0xf]  ;;  %vm582_vm9 = vmmov 0   ;;  %vm271_vm10 = vcmask 23568   ;;  %s583_s2 = smov 64   ;;  %vm372_vm11 = vcmask 31768  }
   0x5   :  { %v41_v8 = vsub.s32 0, %v40_v7  ;;  %v242_v9 = vsub.s32 2, %v40_v7  ;;  %v138_v13 = vsub.s32 1, %v40_v7  ;;  %v343_v14 = vsub.s32 3, %v40_v7  ;;  %508 = vmatprep.mubr.msk.bf16.mxu0 %vm582_vm9, %v580_v43  ;;  %514 = vmatprep.mubr.msk.bf16.mxu1 %vm582_vm9, %v580_v43 }
   0x6   :  { %541 = vset.pattern.permute.xlu0 %v577_v3  ;;  %543 = vset.pattern.permute.xlu1 %v578_v4  ;;  %v492_v52 = vcombine.low %v33_v50, %v33_v50  ;;  %v86_v53 = vsel %vm84_vm8, %v33_v50, 0  ;;  %vm129_vm12 = vcmask 261120   ;;  %vm233_vm13 = vcmask 523520  }
   0x7   :  { %133 = vperm.xlu0 %541, %v29_v1   ;;  %338 = vperm.xlu1 %543, %v29_v1   ;;  %v42_v11 = vrot.slane %v30_v10, %v41_v8  ;;  %v243_v12 = vrot.slane %v30_v10, %v242_v9  ;;  %v139_v20 = vrot.slane %v30_v10, %v138_v13  ;;  %vm334_vm14 = vcmask 785920  }
   0x8   :  { %v344_v22 = vrot.slane %v30_v10, %v343_v14  ;;  %507 = vmatpush3.bf16.msra.mxu0 %v86_v53  ;;  %vm435_vm15 = vcmask 1048320   ;;  %vm467_vm0 = vcmask 523264  }
   0x9   :  { %v48_v44 = vld [vmem:[#allocation2] sm:$0xff]  ;;  %518 = vmatprep.subr.bf16.mxu0 %v580_v43 }
   0xb   :  { %544 = vset.pattern.permute.xlu1 %v575_v0 }
  0x81   :  { %v37_v16 = vpop.permute.xlu0 %36  ;;  %v238_v17 = vpop.permute.xlu1 %237 }
  0x82   :  { %v43_v18 = vadd.f32 %v42_v11, %v37_v16  ;;  %v244_v19 = vadd.f32 %v243_v12, %v238_v17 }
  0x84   :  { %vm44_vm1 = vcmp.gt.f32.partialorder %v43_v18, 0.0  ;;  %v45_v23 = vmul.f32 0.2, %v43_v18  ;;  %v246_v24 = vmul.f32 0.2, %v244_v19  ;;  %vm245_vm3 = vcmp.gt.f32.partialorder %v244_v19, 0.0 }
  0x86   :  { %v134_v25 = vpop.permute.xlu0 %133  ;;  %v46_v26 = vsel %vm44_vm1, %v43_v18, %v45_v23  ;;  %v339_v27 = vpop.permute.xlu1 %338  ;;  %v247_v33 = vsel %vm245_vm3, %v244_v19, %v246_v24  ;;  %vm469_vm1 = vcmask 785408  }
  0x87   :  { %v140_v28 = vadd.f32 %v139_v20, %v134_v25  ;;  %v630_v29 = vadd.f32 %v46_v26, %v32_v21  ;;  %v345_v30 = vadd.f32 %v344_v22, %v339_v27  ;;  %v636_v37 = vadd.f32 %v247_v33, %v32_v21 }
  0x89   :  { %vm141_vm4 = vcmp.gt.f32.partialorder %v140_v28, 0.0  ;;  %v142_v31 = vmul.f32 0.2, %v140_v28  ;;  %v51_v32 = vsel %vm50_vm2, %v630_v29, -inf  ;;  %vm346_vm5 = vcmp.gt.f32.partialorder %v345_v30, 0.0 }
  0x8a   :  { %52 = vmax.xlane.f32.xlu1 %v51_v32  ;;  %v347_v34 = vmul.f32 0.2, %v345_v30  ;;  %v251_v42 = vsel %vm50_vm2, %v636_v37, -inf }
  0x8b   :  { %v143_v35 = vsel %vm141_vm4, %v140_v28, %v142_v31 }
  0x8c   :  { %v634_v36 = vadd.f32 %v143_v35, %v32_v21  ;;  %v348_v38 = vsel %vm346_vm5, %v345_v30, %v347_v34 }
  0x8d   :  { %v638_v39 = vadd.f32 %v348_v38, %v32_v21  ;;  %v49_v38 = vld [vmem:[#allocation3] sm:$0xff] }
  0x8e   :  { %v147_v40 = vsel %vm50_vm2, %v634_v36, -inf }
  0x8f   :  { %148 = vmax.xlane.f32.xlu0 %v147_v40  ;;  %v352_v41 = vsel %vm50_vm2, %v638_v39, -inf }
  0x90   :  { %353 = vmax.xlane.f32.xlu1 %v352_v41 }
  0x93   :  { %252 = vmax.xlane.f32.xlu0 %v251_v42 }
 0x117   :  { %v53_v45 = vpop.xlane.xlu1 %52 }
 0x118   :  { %v54_v46 = vmax.f32 %v48_v44, %v53_v45 }
 0x11a   :  { %131 = vst.msk [vmem:[#allocation2] sm:$0xff] %vm71_vm6, %v54_v46  ;;  %60 = vperm.xlu1 %544, %v54_v46   ;;  %v55_v57 = vsub.f32 %v48_v44, %v54_v46 }
 0x11c   :  { %v149_v48 = vpop.xlane.xlu0 %148  ;;  %v56_v59 = vmul.f32 1.442695, %v55_v57 }
 0x11d   :  { %v354_v60 = vpop.xlane.xlu1 %353 }
 0x11e   :  { %545 = vset.pattern.permute.xlu1 %v576_v2  ;;  %555 = vpow2.f32 %v56_v59 }
 0x120   :  { %v253_v55 = vpop.xlane.xlu0 %252 }
 0x121   :  { %v653_v47 = vld [vmem:[#allocation2] sm:$0xff] }
 0x122   :  { %v656_v49 = vmax.f32 %v653_v47, %v149_v48 }
 0x124   :  { %v151_v51 = vsub.f32 %v653_v47, %v656_v49  ;;  %235 = vst.msk [vmem:[#allocation2] sm:$0xff] %vm167_vm7, %v656_v49  ;;  %156 = vperm.xlu0 %541, %v656_v49  }
 0x126   :  { %v152_v20 = vmul.f32 1.442695, %v151_v51 }
 0x128   :  { %180 = vrot.lane.b32.xlu0 %v492_v52, %s581_s23  ;;  %v556_v1 = vpop.eup %555 }
 0x12b   :  { %v249_v54 = vld [vmem:[#allocation2] sm:$0xff] }
 0x12c   :  { %v254_v56 = vmax.f32 %v249_v54, %v253_v55  ;;  %281 = vrot.lane.b32.xlu0 %v492_v52, %s583_s2 }
 0x12e   :  { %v255_v58 = vsub.f32 %v249_v54, %v254_v56  ;;  %336 = vst.msk [vmem:[#allocation2] sm:$0xff] %vm271_vm10, %v254_v56  ;;  %260 = vperm.xlu1 %545, %v254_v56  }
 0x130   :  { %v256_v24 = vmul.f32 1.442695, %v255_v58 }
 0x132   :  { %546 = vset.pattern.permute.xlu1 %v578_v4 }
 0x135   :  { %v676_v61 = vld [vmem:[#allocation2] sm:$0xff] }
 0x136   :  { %v679_v62 = vmax.f32 %v676_v61, %v354_v60 }
 0x138   :  { %v356_v63 = vsub.f32 %v676_v61, %v679_v62  ;;  %437 = vst.msk [vmem:[#allocation2] sm:$0xff] %vm372_vm11, %v679_v62  ;;  %361 = vperm.xlu1 %546, %v679_v62  }
 0x13a   :  { %v357_v47 = vmul.f32 1.442695, %v356_v63 }
 0x13c   :  { %382 = vrot.lane.b32.xlu1 %v492_v52, %s584_s24 }
 0x13d   :  { %547 = vset.pattern.permute.xlu1 %v575_v0 }
 0x140   :  { %76 = vperm.xlu1 %547, %v556_v1  }
 0x199   :  { %v61_v5 = vpop.permute.xlu1 %60 }
 0x19a   :  { %v63_v6 = vsub.f32 %v630_v29, %v61_v5 }
 0x19c   :  { %v64_v7 = vmul.f32 1.442695, %v63_v6 }
 0x19e   :  { %557 = vpow2.f32 %v64_v7 }
 0x1a3   :  { %v157_v8 = vpop.permute.xlu0 %156 }
 0x1a4   :  { %v159_v9 = vsub.f32 %v634_v36, %v157_v8 }
 0x1a6   :  { %v160_v10 = vmul.f32 1.442695, %v159_v9 }
 0x1a7   :  { %v181_v11 = vpop.permute.xlu0 %180 }
 0x1a8   :  { %v558_v12 = vpop.eup %557  ;;  %559 = vpow2.f32 %v160_v10  ;;  %v186_v13 = vsel %vm84_vm8, %v181_v11, 0 }
 0x1a9   :  { %v67_v14 = vsel %vm50_vm2, %v558_v12, 0.0  ;;  %v80_v15 = vpack.c.bf16 %v558_v12, %v558_v12  ;;  %513 = vmatpush3.bf16.msra.mxu1 %v186_v13 }
 0x1aa   :  { %68 = vadd.xlane.f32.xlu0 %v67_v14  ;;  %524 = vmatprep.subr.bf16.mxu1 %v580_v43 }
 0x1ab   :  { %509 = vmatmul.mubr.msk.bf16.vlgmr.msra.gmra.mrb[0].mxu0 %vm50_vm2, %v80_v15  ;;  %v282_v0 = vpop.permute.xlu0 %281 }
 0x1ac   :  { %v287_v16 = vsel %vm84_vm8, %v282_v0, 0  ;;  %520 = vmatprep.mubr.msk.bf16.mxu0 %vm582_vm9, %v580_v43 }
 0x1ad   :  { %v261_v17 = vpop.permute.xlu1 %260  ;;  %519 = vmatpush3.bf16.msra.mxu0 %v287_v16 }
 0x1ae   :  { %v263_v18 = vsub.f32 %v636_v37, %v261_v17 }
 0x1b0   :  { %v264_v19 = vmul.f32 1.442695, %v263_v18 }
 0x1b2   :  { %v560_v21 = vpop.eup %559  ;;  %561 = vpow2.f32 %v264_v19 }
 0x1b3   :  { %v163_v22 = vsel %vm50_vm2, %v560_v21, 0.0  ;;  %v176_v23 = vpack.c.bf16 %v560_v21, %v560_v21  ;;  %563 = vpow2.f32 %v152_v20 }
 0x1b4   :  { %164 = vadd.xlane.f32.xlu1 %v163_v22  ;;  %565 = vpow2.f32 %v256_v24 }
 0x1b5   :  { %515 = vmatmul.mubr.msk.bf16.vlgmr.msra.gmra.mrb[0].mxu1 %vm50_vm2, %v176_v23 }
 0x1b6   :  { %526 = vmatprep.mubr.msk.bf16.mxu1 %vm582_vm9, %v580_v43 }
 0x1b7   :  { %v362_v25 = vpop.permute.xlu1 %361 }
 0x1b8   :  { %v364_v26 = vsub.f32 %v638_v39, %v362_v25  ;;  %v66_v39 = vmul.f32 %v556_v1, %v49_v38 }
 0x1ba   :  { %v365_v27 = vmul.f32 1.442695, %v364_v26 }
 0x1bb   :  { %v383_v28 = vpop.permute.xlu1 %382 }
 0x1bc   :  { %v562_v29 = vpop.eup %561  ;;  %567 = vpow2.f32 %v365_v27  ;;  %v388_v30 = vsel %vm84_vm8, %v383_v28, 0 }
 0x1bd   :  { %v267_v31 = vsel %vm50_vm2, %v562_v29, 0.0  ;;  %v280_v32 = vpack.c.bf16 %v562_v29, %v562_v29  ;;  %525 = vmatpush3.bf16.msra.mxu1 %v388_v30  ;;  %v564_v33 = vpop.eup %563  ;;  %569 = vpow2.f32 %v357_v47 }
 0x1be   :  { %268 = vadd.xlane.f32.xlu1 %v267_v31  ;;  %v566_v34 = vpop.eup %565 }
 0x1bf   :  { %521 = vmatmul.mubr.msk.bf16.vlgmr.msra.gmra.mrb[4].mxu0 %vm50_vm2, %v280_v32  ;;  %v77_v42 = vpop.permute.xlu1 %76 }
 0x1c0   :  { %172 = vperm.xlu0 %541, %v564_v33   ;;  %v79_v58 = vmul.f32 0.0, %v77_v42 }
 0x1c4   :  { %548 = vset.pattern.permute.xlu0 %v576_v2 }
 0x1c5   :  { %276 = vperm.xlu0 %548, %v566_v34  }
 0x1c6   :  { %v568_v35 = vpop.eup %567 }
 0x1c7   :  { %v368_v36 = vsel %vm50_vm2, %v568_v35, 0.0  ;;  %v381_v37 = vpack.c.bf16 %v568_v35, %v568_v35  ;;  %v570_v52 = vpop.eup %569 }
 0x1c8   :  { %369 = vadd.xlane.f32.xlu1 %v368_v36 }
 0x1c9   :  { %527 = vmatmul.mubr.msk.bf16.vlgmr.msra.gmra.mrb[4].mxu1 %vm50_vm2, %v381_v37  ;;  %549 = vset.pattern.permute.xlu0 %v578_v4 }
 0x237   :  { %v69_v40 = vpop.xlane.xlu0 %68 }
 0x238   :  { %v70_v41 = vadd.f32 %v69_v40, %v66_v39  ;;  %v496_v39 = vld [vmem:[%s736_s4] ss:$0 sm:$0xff] }
 0x23a   :  { %72 = vst.msk [vmem:[#allocation3] sm:$0xff] %vm71_vm6, %v70_v41 }
 0x23f   :  { %v173_v17 = vpop.permute.xlu0 %172 }
 0x241   :  { %v146_v43 = vld [vmem:[#allocation3] sm:$0xff]  ;;  %v165_v45 = vpop.xlane.xlu1 %164 }
 0x242   :  { %v162_v44 = vmul.f32 %v564_v33, %v146_v43 }
 0x244   :  { %v166_v46 = vadd.f32 %v165_v45, %v162_v44 }
 0x246   :  { %168 = vst.msk [vmem:[#allocation3] sm:$0xff] %vm167_vm7, %v166_v46 }
 0x24b   :  { %v269_v50 = vpop.xlane.xlu1 %268 }
 0x24d   :  { %v250_v48 = vld [vmem:[#allocation3] sm:$0xff] }
 0x24e   :  { %v266_v49 = vmul.f32 %v566_v34, %v250_v48 }
 0x250   :  { %v270_v51 = vadd.f32 %v269_v50, %v266_v49 }
 0x252   :  { %272 = vst.msk [vmem:[#allocation3] sm:$0xff] %vm271_vm10, %v270_v51 }
 0x255   :  { %v370_v55 = vpop.xlane.xlu1 %369 }
 0x259   :  { %v351_v53 = vld [vmem:[#allocation3] sm:$0xff] }
 0x25a   :  { %v367_v54 = vmul.f32 %v570_v52, %v351_v53 }
 0x25c   :  { %v371_v56 = vadd.f32 %v370_v55, %v367_v54 }
 0x25e   :  { %373 = vst.msk [vmem:[#allocation3] sm:$0xff] %vm372_vm11, %v371_v56 }
 0x265   :  { %v441_v57 = vld [vmem:[#allocation3] sm:$0xff] }
 0x266   :  { %v442_v59 = vmax.f32 %v441_v57, 1e-30 }
 0x268   :  { %571 = vrcp.f32 %v442_v59 }
 0x272   :  { %v572_v9 = vpop.eup %571 }
 0x27e   :  { %v122_v60 = vpop.f32.mrb[0].mxu0 }
 0x27f   :  { %v128_v61 = vadd.f32 %v122_v60, %v79_v58  ;;  %v510_v62 = vpop.f32.mrb[1].mxu0 }
 0x280   :  { %v125_v63 = vpop.f32.mrb[2].mxu0 }
 0x281   :  { %130 = vst.msk [vmem:[#allocation4] sm:$0xff] %vm129_vm12, %v128_v61  ;;  %v511_v1 = vpop.f32.mrb[3].mxu0 }
 0x288   :  { %v222_v5 = vpop.f32.mrb[0].mxu1 }
 0x289   :  { %229 = vrot.lane.b32.xlu1 %v222_v5, %s584_s24  ;;  %v516_v6 = vpop.f32.mrb[1].mxu1 }
 0x28a   :  { %v225_v7 = vpop.f32.mrb[2].mxu1 }
 0x28b   :  { %v517_v8 = vpop.f32.mrb[3].mxu1 }
 0x28d   :  { %447 = vperm.xlu1 %547, %v572_v9  }
 0x291   :  { %551 = vset.pattern.permute.xlu1 %v576_v2  ;;  %v169_v2 = vld [vmem:[#allocation4] sm:$0xff] }
 0x292   :  { %v323_v10 = vpop.f32.mrb[4].mxu0  ;;  %v175_v18 = vmul.f32 %v173_v17, %v169_v2 }
 0x293   :  { %330 = vrot.lane.b32.xlu0 %v323_v10, %s583_s2  ;;  %v522_v11 = vpop.f32.mrb[5].mxu0 }
 0x294   :  { %v326_v12 = vpop.f32.mrb[6].mxu0 }
 0x295   :  { %v523_v13 = vpop.f32.mrb[7].mxu0 }
 0x297   :  { %377 = vperm.xlu0 %549, %v570_v52  }
 0x29b   :  { %550 = vset.pattern.permute.xlu0 %v577_v3  ;;  %v277_v3 = vpop.permute.xlu0 %276 }
 0x29c   :  { %v424_v14 = vpop.f32.mrb[4].mxu1  ;;  %452 = vperm.xlu0 %550, %v572_v9  }
 0x29d   :  { %v528_v15 = vpop.f32.mrb[5].mxu1  ;;  %431 = vrot.lane.b32.xlu1 %v424_v14, %s581_s23 }
 0x29e   :  { %v427_v0 = vpop.f32.mrb[6].mxu1 }
 0x29f   :  { %v529_v16 = vpop.f32.mrb[7].mxu1 }
 0x2a0   :  { %553 = vset.pattern.permute.xlu0 %v578_v4 }
 0x2a1   :  { %457 = vperm.xlu1 %551, %v572_v9  }
 0x2a5   :  { %552 = vset.pattern.permute.xlu1 %v578_v4 }
 0x2a6   :  { %462 = vperm.xlu1 %552, %v572_v9  }
 0x2fb   :  { %v230_v19 = vpop.permute.xlu1 %229 }
 0x2fc   :  { %v232_v20 = vadd.f32 %v230_v19, %v175_v18 }
 0x2fe   :  { %234 = vst.msk [vmem:[#allocation4] sm:$0xff] %vm233_vm13, %v232_v20 }
 0x305   :  { %v273_v21 = vld [vmem:[#allocation4] sm:$0xff]  ;;  %v331_v23 = vpop.permute.xlu0 %330 }
 0x306   :  { %v279_v22 = vmul.f32 %v277_v3, %v273_v21 }
 0x308   :  { %v333_v24 = vadd.f32 %v331_v23, %v279_v22 }
 0x30a   :  { %335 = vst.msk [vmem:[#allocation4] sm:$0xff] %vm334_vm14, %v333_v24 }
 0x30c   :  { %v448_v25 = vpop.permute.xlu1 %447 }
 0x310   :  { %v432_v4 = vpop.permute.xlu1 %431 }
 0x311   :  { %v374_v26 = vld [vmem:[#allocation4] sm:$0xff] }
 0x316   :  { %v378_v27 = vpop.permute.xlu0 %377 }
 0x317   :  { %v380_v28 = vmul.f32 %v378_v27, %v374_v26 }
 0x319   :  { %v434_v29 = vadd.f32 %v432_v4, %v380_v28 }
 0x31b   :  { %436 = vst.msk [vmem:[#allocation4] sm:$0xff] %vm435_vm15, %v434_v29  ;;  %v453_v32 = vpop.permute.xlu0 %452 }
 0x320   :  { %v458_v30 = vpop.permute.xlu1 %457 }
 0x322   :  { %v444_v31 = vld [vmem:[#allocation4] sm:$0xff] }
 0x323   :  { %v450_v33 = vmul.f32 %v448_v25, %v444_v31  ;;  %v455_v34 = vmul.f32 %v453_v32, %v444_v31  ;;  %v460_v35 = vmul.f32 %v458_v30, %v444_v31 }
 0x325   :  { %v466_v36 = vsel %vm129_vm12, %v450_v33, %v455_v34  ;;  %v463_v37 = vpop.permute.xlu1 %462 }
 0x326   :  { %v468_v38 = vsel %vm467_vm0, %v466_v36, %v460_v35  ;;  %v465_v40 = vmul.f32 %v463_v37, %v444_v31 }
 0x328   :  { %v470_v41 = vsel %vm469_vm1, %v468_v38, %v465_v40 }
 0x329   :  { %v478_v42 = vadd.f32 %v496_v39, %v470_v41 }
 0x32b   :  { %v480_v43 = vmin.f32 %v478_v42, 0.0  ;;  %vm479_vm2 = vcmp.gt.f32.partialorder %v478_v42, 0.0 }
 0x32d   :  { %v481_v44 = vmul.f32 1.442695, %v480_v43 }
 0x32f   :  { %573 = vpow2.f32 %v481_v44 }
 0x339   :  { %v574_v45 = vpop.eup %573 }
 0x33a   :  { %v497_v46 = vadd.f32 -1.0, %v574_v45 }
 0x33c   :  { %v484_v47 = vsel %vm479_vm2, %v478_v42, %v497_v46 }
 0x33d   :  { %v485_v48 = vpack.c.bf16 %v484_v47, %v484_v47 }
 0x33f   :  { %486 = vst [vmem:[%s737_s5] sm:$0xf] %v485_v48 }

</bundles_post_ra>
